<compile_context>
chip_gen: v5e
topology: v5e:2x2
jax: 0.10.0
libtpu: 0.0.40
codegen_flags: <defaults>
</compile_context>

<pallas_src>
import functools

import jax
import jax.numpy as jnp
from jax.experimental import pallas as pl
from jax.experimental.pallas import tpu as pltpu


def _sigmoid_tanh(z):
    # logistic via tanh: transcendental on the EUP, no VPU divide.
    return 0.5 * (jnp.tanh(0.5 * z) + 1.0)


def pd_lstm_kernel(x_ref, h0_ref, c0_ref, wih_ref, whh_ref, b_ref,
                   w1_ref, b1_ref, w2_ref, b2_ref, out_ref):
    """Single-invocation PD_LSTM forward.

    x_ref   : (T*Bp, C)  time-major inputs, batch padded to Bp rows
    h0_ref  : (Bp, H)
    c0_ref  : (Bp, H)
    wih_ref : (4, C, H)  per-gate input weights   (gate order i, f, g, o)
    whh_ref : (4, H, H)  per-gate recurrent weights
    b_ref   : (4, 1, H)  per-gate fused bias (b_ih + b_hh)
    w1_ref  : (H, FC1), b1_ref : (1, FC1)
    w2_ref  : (FC1, NC), b2_ref : (1, NC)
    out_ref : (Bp, NC)   softmax probabilities
    """
    TB, C = x_ref.shape
    Bp, H = h0_ref.shape
    T = TB // Bp

    x2 = x_ref[...]                                      # (T*Bp, C)

    # Hoisted input projection: one MXU pass per gate over the whole sequence.
    xg = [jnp.dot(x2, wih_ref[g], preferred_element_type=jnp.float32)
          + b_ref[g]
          for g in range(4)]                             # 4 x (T*Bp, H)
    whh = [whh_ref[g] for g in range(4)]                 # 4 x (H, H)

    h = h0_ref[...]                                      # (Bp, H)
    c = c0_ref[...]                                      # (Bp, H)

    # Statically unrolled recurrence; h/c stay in registers, all slices are
    # static and sublane-aligned (multiples of Bp=8 rows), no lane slicing.
    for t in range(T):
        lo = t * Bp
        i_g = _sigmoid_tanh(
            xg[0][lo:lo + Bp, :]
            + jnp.dot(h, whh[0], preferred_element_type=jnp.float32))
        f_g = _sigmoid_tanh(
            xg[1][lo:lo + Bp, :]
            + jnp.dot(h, whh[1], preferred_element_type=jnp.float32))
        g_g = jnp.tanh(
            xg[2][lo:lo + Bp, :]
            + jnp.dot(h, whh[2], preferred_element_type=jnp.float32))
        o_g = _sigmoid_tanh(
            xg[3][lo:lo + Bp, :]
            + jnp.dot(h, whh[3], preferred_element_type=jnp.float32))
        c = f_g * c + i_g * g_g
        h = o_g * jnp.tanh(c)

    # Classifier head: relu -> (dropout = identity in eval) -> fc_1 -> relu
    #                  -> fc -> softmax(dim=1)
    hn = jnp.maximum(h, 0.0)
    z1 = jnp.dot(hn, w1_ref[...],
                 preferred_element_type=jnp.float32) + b1_ref[...]
    z1 = jnp.maximum(z1, 0.0)
    z2 = jnp.dot(z1, w2_ref[...],
                 preferred_element_type=jnp.float32) + b2_ref[...]
    m = jnp.max(z2, axis=1, keepdims=True)
    e = jnp.exp(z2 - m)
    out_ref[...] = (e / jnp.sum(e, axis=1, keepdims=True)).astype(out_ref.dtype)


@jax.jit
def pd_lstm_forward(x, h0, c0, w_ih, w_hh, b, w1, b1, w2, b2):
    """x: (B, input_size, T) NCT  ->  softmax probs (B, num_classes)."""
    B, C, T = x.shape
    H = h0.shape[-1]
    NC = w2.shape[-1]

    # Pad batch to a full f32 sublane tile (8 rows): unmasked vreg math inside.
    Bp = max(8, ((B + 7) // 8) * 8)

    def pad_batch(a):
        return jnp.pad(a, ((0, Bp - B),) + ((0, 0),) * (a.ndim - 1))

    x_p = pad_batch(x)                                   # (Bp, C, T)
    h0_p = pad_batch(h0)                                 # (Bp, H)
    c0_p = pad_batch(c0)                                 # (Bp, H)

    # Time-major, collapse (T, Bp) -> rows so the whole-sequence input
    # projection is a single well-shaped matmul inside the kernel.
    x2 = jnp.transpose(x_p, (2, 0, 1)).reshape(T * Bp, C)

    # Split gate-stacked LSTM weights into per-gate, lane-aligned matrices
    # (torch.nn.LSTM gate order: i, f, g, o).
    wih_g = jnp.stack([w_ih[:, k * H:(k + 1) * H] for k in range(4)])  # (4,C,H)
    whh_g = jnp.stack([w_hh[:, k * H:(k + 1) * H] for k in range(4)])  # (4,H,H)
    b_g = jnp.stack([b[:, k * H:(k + 1) * H] for k in range(4)])       # (4,1,H)

    vmem_spec = functools.partial(
        pl.BlockSpec, memory_space=pltpu.MemorySpace.VMEM)

    out = pl.pallas_call(
        pd_lstm_kernel,
        out_shape=jax.ShapeDtypeStruct((Bp, NC), jnp.float32),
        in_specs=[vmem_spec() for _ in range(10)],
        out_specs=vmem_spec(),
    )(x2, h0_p, c0_p, wih_g, whh_g, b_g, w1, b1, w2, b2)
    return out[:B]


def reference_forward(x, h0, c0, w_ih, w_hh, b, w1, b1, w2, b2):
    """Pure-JAX reference (mirrors the PyTorch forward in eval mode)."""
    xs = jnp.transpose(x, (2, 0, 1))  # (T, B, C)
    H = h0.shape[-1]

    def step(carry, x_t):
        h, c = carry
        gates = x_t @ w_ih + h @ w_hh + b
        i = jax.nn.sigmoid(gates[:, :H])
        f = jax.nn.sigmoid(gates[:, H:2 * H])
        g = jnp.tanh(gates[:, 2 * H:3 * H])
        o = jax.nn.sigmoid(gates[:, 3 * H:])
        c = f * c + i * g
        h = o * jnp.tanh(c)
        return (h, c), None

    (h, _), _ = jax.lax.scan(step, (h0, c0), xs)
    hn = jnp.maximum(h, 0.0)
    z1 = jnp.maximum(hn @ w1 + b1, 0.0)
    z2 = z1 @ w2 + b2
    return jax.nn.softmax(z2, axis=1)


if __name__ == "__main__":
    # Small shapes consistent with the module's forward:
    B, INPUT_SIZE, SEQ_LEN = 2, 16, 16
    HIDDEN, FC1_DIM, NUM_CLASSES = 8, 32, 2

    key = jax.random.PRNGKey(0)
    keys = jax.random.split(key, 12)

    # input: (batch, input_size, seq_length) -- NCT, as fed to the PyTorch module
    x = jax.random.normal(keys[0], (B, INPUT_SIZE, SEQ_LEN), jnp.float32)

    # h_0 / c_0: the PyTorch forward draws torch.rand; drawn deterministically here
    h0 = jax.random.uniform(keys[1], (B, HIDDEN), jnp.float32)
    c0 = jax.random.uniform(keys[2], (B, HIDDEN), jnp.float32)

    # LSTM parameters (stored pre-transposed: (in, 4H) / (H, 4H)), gate order i,f,g,o
    s = 1.0 / jnp.sqrt(HIDDEN)
    w_ih = jax.random.uniform(keys[3], (INPUT_SIZE, 4 * HIDDEN), jnp.float32, -s, s)
    w_hh = jax.random.uniform(keys[4], (HIDDEN, 4 * HIDDEN), jnp.float32, -s, s)
    b_ih = jax.random.uniform(keys[5], (1, 4 * HIDDEN), jnp.float32, -s, s)
    b_hh = jax.random.uniform(keys[6], (1, 4 * HIDDEN), jnp.float32, -s, s)
    b = b_ih + b_hh

    # fc_1: hidden -> 32 ; fc: 32 -> num_classes  (stored as (in, out))
    s1 = 1.0 / jnp.sqrt(HIDDEN)
    w1 = jax.random.uniform(keys[7], (HIDDEN, FC1_DIM), jnp.float32, -s1, s1)
    b1 = jax.random.uniform(keys[8], (1, FC1_DIM), jnp.float32, -s1, s1)
    s2 = 1.0 / jnp.sqrt(FC1_DIM)
    w2 = jax.random.uniform(keys[9], (FC1_DIM, NUM_CLASSES), jnp.float32, -s2, s2)
    b2 = jax.random.uniform(keys[10], (1, NUM_CLASSES), jnp.float32, -s2, s2)

    out = pd_lstm_forward(x, h0, c0, w_ih, w_hh, b, w1, b1, w2, b2)
    out = jax.block_until_ready(out)

    ref = reference_forward(x, h0, c0, w_ih, w_hh, b, w1, b1, w2, b2)
    assert out.shape == (B, NUM_CLASSES)
    # tolerance covers the tanh-form sigmoid vs exp-form sigmoid and the
    # regrouped (whole-sequence) input-projection matmul.
    assert jnp.allclose(out, ref, atol=1e-4, rtol=1e-4), (out, ref)
    assert jnp.allclose(jnp.sum(out, axis=1), 1.0, atol=1e-5)

    print("KERNEL_OK")
</pallas_src>

<mosaic_0001>
module attributes {stable_mosaic.version = 11 : i64} {
  func.func @pd_lstm_kernel(%arg0: memref<128x16xf32, #tpu.memory_space<vmem>>, %arg1: memref<8x8xf32, #tpu.memory_space<vmem>>, %arg2: memref<8x8xf32, #tpu.memory_space<vmem>>, %arg3: memref<4x16x8xf32, #tpu.memory_space<vmem>>, %arg4: memref<4x8x8xf32, #tpu.memory_space<vmem>>, %arg5: memref<4x1x8xf32, #tpu.memory_space<vmem>>, %arg6: memref<8x32xf32, #tpu.memory_space<vmem>>, %arg7: memref<1x32xf32, #tpu.memory_space<vmem>>, %arg8: memref<32x2xf32, #tpu.memory_space<vmem>>, %arg9: memref<1x2xf32, #tpu.memory_space<vmem>>, %arg10: memref<8x2xf32, #tpu.memory_space<vmem>>) attributes {dimension_semantics = [], scalar_prefetch = 0 : i64, scratch_operands = 0 : i64, tpu.core_type = #tpu.core_type<tc>} {
    %c0 = arith.constant 0 : index
    %c0_0 = arith.constant 0 : index
    %0 = vector.load %arg0[%c0, %c0_0] : memref<128x16xf32, #tpu.memory_space<vmem>>, vector<128x16xf32>
    %c0_1 = arith.constant 0 : index
    %c0_2 = arith.constant 0 : index
    %c0_3 = arith.constant 0 : index
    %1 = vector.load %arg3[%c0_1, %c0_2, %c0_3] : memref<4x16x8xf32, #tpu.memory_space<vmem>>, vector<1x16x8xf32>
    %2 = vector.shape_cast %1 : vector<1x16x8xf32> to vector<16x8xf32>
    %cst = arith.constant dense<0.000000e+00> : vector<128x8xf32>
    %3 = tpu.matmul %0, %2, %cst {dimension_numbers = #tpu.dot_dimension_numbers<[1], [0], [0], [1], [0, 0, 1, 1], [], []>} : vector<128x16xf32>, vector<16x8xf32>, vector<128x8xf32> -> vector<128x8xf32>
    %c0_4 = arith.constant 0 : index
    %c0_5 = arith.constant 0 : index
    %c0_6 = arith.constant 0 : index
    %4 = vector.load %arg5[%c0_4, %c0_5, %c0_6] : memref<4x1x8xf32, #tpu.memory_space<vmem>>, vector<1x1x8xf32>
    %5 = vector.shape_cast %4 : vector<1x1x8xf32> to vector<1x8xf32>
    %6 = vector.broadcast %5 : vector<1x8xf32> to vector<128x8xf32>
    %7 = arith.addf %3, %6 : vector<128x8xf32>
    %c1 = arith.constant 1 : index
    %c0_7 = arith.constant 0 : index
    %c0_8 = arith.constant 0 : index
    %8 = vector.load %arg3[%c1, %c0_7, %c0_8] : memref<4x16x8xf32, #tpu.memory_space<vmem>>, vector<1x16x8xf32>
    %9 = vector.shape_cast %8 : vector<1x16x8xf32> to vector<16x8xf32>
    %cst_9 = arith.constant dense<0.000000e+00> : vector<128x8xf32>
    %10 = tpu.matmul %0, %9, %cst_9 {dimension_numbers = #tpu.dot_dimension_numbers<[1], [0], [0], [1], [0, 0, 1, 1], [], []>} : vector<128x16xf32>, vector<16x8xf32>, vector<128x8xf32> -> vector<128x8xf32>
    %c1_10 = arith.constant 1 : index
    %c0_11 = arith.constant 0 : index
    %c0_12 = arith.constant 0 : index
    %11 = vector.load %arg5[%c1_10, %c0_11, %c0_12] : memref<4x1x8xf32, #tpu.memory_space<vmem>>, vector<1x1x8xf32>
    %12 = vector.shape_cast %11 : vector<1x1x8xf32> to vector<1x8xf32>
    %13 = vector.broadcast %12 : vector<1x8xf32> to vector<128x8xf32>
    %14 = arith.addf %10, %13 : vector<128x8xf32>
    %c2 = arith.constant 2 : index
    %c0_13 = arith.constant 0 : index
    %c0_14 = arith.constant 0 : index
    %15 = vector.load %arg3[%c2, %c0_13, %c0_14] : memref<4x16x8xf32, #tpu.memory_space<vmem>>, vector<1x16x8xf32>
    %16 = vector.shape_cast %15 : vector<1x16x8xf32> to vector<16x8xf32>
    %cst_15 = arith.constant dense<0.000000e+00> : vector<128x8xf32>
    %17 = tpu.matmul %0, %16, %cst_15 {dimension_numbers = #tpu.dot_dimension_numbers<[1], [0], [0], [1], [0, 0, 1, 1], [], []>} : vector<128x16xf32>, vector<16x8xf32>, vector<128x8xf32> -> vector<128x8xf32>
    %c2_16 = arith.constant 2 : index
    %c0_17 = arith.constant 0 : index
    %c0_18 = arith.constant 0 : index
    %18 = vector.load %arg5[%c2_16, %c0_17, %c0_18] : memref<4x1x8xf32, #tpu.memory_space<vmem>>, vector<1x1x8xf32>
    %19 = vector.shape_cast %18 : vector<1x1x8xf32> to vector<1x8xf32>
    %20 = vector.broadcast %19 : vector<1x8xf32> to vector<128x8xf32>
    %21 = arith.addf %17, %20 : vector<128x8xf32>
    %c3 = arith.constant 3 : index
    %c0_19 = arith.constant 0 : index
    %c0_20 = arith.constant 0 : index
    %22 = vector.load %arg3[%c3, %c0_19, %c0_20] : memref<4x16x8xf32, #tpu.memory_space<vmem>>, vector<1x16x8xf32>
    %23 = vector.shape_cast %22 : vector<1x16x8xf32> to vector<16x8xf32>
    %cst_21 = arith.constant dense<0.000000e+00> : vector<128x8xf32>
    %24 = tpu.matmul %0, %23, %cst_21 {dimension_numbers = #tpu.dot_dimension_numbers<[1], [0], [0], [1], [0, 0, 1, 1], [], []>} : vector<128x16xf32>, vector<16x8xf32>, vector<128x8xf32> -> vector<128x8xf32>
    %c3_22 = arith.constant 3 : index
    %c0_23 = arith.constant 0 : index
    %c0_24 = arith.constant 0 : index
    %25 = vector.load %arg5[%c3_22, %c0_23, %c0_24] : memref<4x1x8xf32, #tpu.memory_space<vmem>>, vector<1x1x8xf32>
    %26 = vector.shape_cast %25 : vector<1x1x8xf32> to vector<1x8xf32>
    %27 = vector.broadcast %26 : vector<1x8xf32> to vector<128x8xf32>
    %28 = arith.addf %24, %27 : vector<128x8xf32>
    %c0_25 = arith.constant 0 : index
    %c0_26 = arith.constant 0 : index
    %c0_27 = arith.constant 0 : index
    %29 = vector.load %arg4[%c0_25, %c0_26, %c0_27] : memref<4x8x8xf32, #tpu.memory_space<vmem>>, vector<1x8x8xf32>
    %30 = vector.shape_cast %29 : vector<1x8x8xf32> to vector<8x8xf32>
    %c1_28 = arith.constant 1 : index
    %c0_29 = arith.constant 0 : index
    %c0_30 = arith.constant 0 : index
    %31 = vector.load %arg4[%c1_28, %c0_29, %c0_30] : memref<4x8x8xf32, #tpu.memory_space<vmem>>, vector<1x8x8xf32>
    %32 = vector.shape_cast %31 : vector<1x8x8xf32> to vector<8x8xf32>
    %c2_31 = arith.constant 2 : index
    %c0_32 = arith.constant 0 : index
    %c0_33 = arith.constant 0 : index
    %33 = vector.load %arg4[%c2_31, %c0_32, %c0_33] : memref<4x8x8xf32, #tpu.memory_space<vmem>>, vector<1x8x8xf32>
    %34 = vector.shape_cast %33 : vector<1x8x8xf32> to vector<8x8xf32>
    %c3_34 = arith.constant 3 : index
    %c0_35 = arith.constant 0 : index
    %c0_36 = arith.constant 0 : index
    %35 = vector.load %arg4[%c3_34, %c0_35, %c0_36] : memref<4x8x8xf32, #tpu.memory_space<vmem>>, vector<1x8x8xf32>
    %36 = vector.shape_cast %35 : vector<1x8x8xf32> to vector<8x8xf32>
    %c0_37 = arith.constant 0 : index
    %c0_38 = arith.constant 0 : index
    %37 = vector.load %arg1[%c0_37, %c0_38] : memref<8x8xf32, #tpu.memory_space<vmem>>, vector<8x8xf32>
    %c0_39 = arith.constant 0 : index
    %c0_40 = arith.constant 0 : index
    %38 = vector.load %arg2[%c0_39, %c0_40] : memref<8x8xf32, #tpu.memory_space<vmem>>, vector<8x8xf32>
    %39 = vector.extract_strided_slice %7 {offsets = [0, 0], sizes = [8, 8], strides = [1, 1]} : vector<128x8xf32> to vector<8x8xf32>
    %cst_41 = arith.constant dense<0.000000e+00> : vector<8x8xf32>
    %40 = tpu.matmul %37, %30, %cst_41 {dimension_numbers = #tpu.dot_dimension_numbers<[1], [0], [0], [1], [0, 0, 1, 1], [], []>} : vector<8x8xf32>, vector<8x8xf32>, vector<8x8xf32> -> vector<8x8xf32>
    %41 = arith.addf %39, %40 : vector<8x8xf32>
    %cst_42 = arith.constant 5.000000e-01 : f32
    %42 = vector.broadcast %cst_42 : f32 to vector<8x8xf32>
    %43 = arith.mulf %42, %41 : vector<8x8xf32>
    %44 = math.tanh %43 : vector<8x8xf32>
    %cst_43 = arith.constant 1.000000e+00 : f32
    %45 = vector.broadcast %cst_43 : f32 to vector<8x8xf32>
    %46 = arith.addf %44, %45 : vector<8x8xf32>
    %cst_44 = arith.constant 5.000000e-01 : f32
    %47 = vector.broadcast %cst_44 : f32 to vector<8x8xf32>
    %48 = arith.mulf %47, %46 : vector<8x8xf32>
    %49 = vector.extract_strided_slice %14 {offsets = [0, 0], sizes = [8, 8], strides = [1, 1]} : vector<128x8xf32> to vector<8x8xf32>
    %cst_45 = arith.constant dense<0.000000e+00> : vector<8x8xf32>
    %50 = tpu.matmul %37, %32, %cst_45 {dimension_numbers = #tpu.dot_dimension_numbers<[1], [0], [0], [1], [0, 0, 1, 1], [], []>} : vector<8x8xf32>, vector<8x8xf32>, vector<8x8xf32> -> vector<8x8xf32>
    %51 = arith.addf %49, %50 : vector<8x8xf32>
    %cst_46 = arith.constant 5.000000e-01 : f32
    %52 = vector.broadcast %cst_46 : f32 to vector<8x8xf32>
    %53 = arith.mulf %52, %51 : vector<8x8xf32>
    %54 = math.tanh %53 : vector<8x8xf32>
    %cst_47 = arith.constant 1.000000e+00 : f32
    %55 = vector.broadcast %cst_47 : f32 to vector<8x8xf32>
    %56 = arith.addf %54, %55 : vector<8x8xf32>
    %cst_48 = arith.constant 5.000000e-01 : f32
    %57 = vector.broadcast %cst_48 : f32 to vector<8x8xf32>
    %58 = arith.mulf %57, %56 : vector<8x8xf32>
    %59 = vector.extract_strided_slice %21 {offsets = [0, 0], sizes = [8, 8], strides = [1, 1]} : vector<128x8xf32> to vector<8x8xf32>
    %cst_49 = arith.constant dense<0.000000e+00> : vector<8x8xf32>
    %60 = tpu.matmul %37, %34, %cst_49 {dimension_numbers = #tpu.dot_dimension_numbers<[1], [0], [0], [1], [0, 0, 1, 1], [], []>} : vector<8x8xf32>, vector<8x8xf32>, vector<8x8xf32> -> vector<8x8xf32>
    %61 = arith.addf %59, %60 : vector<8x8xf32>
    %62 = math.tanh %61 : vector<8x8xf32>
    %63 = vector.extract_strided_slice %28 {offsets = [0, 0], sizes = [8, 8], strides = [1, 1]} : vector<128x8xf32> to vector<8x8xf32>
    %cst_50 = arith.constant dense<0.000000e+00> : vector<8x8xf32>
    %64 = tpu.matmul %37, %36, %cst_50 {dimension_numbers = #tpu.dot_dimension_numbers<[1], [0], [0], [1], [0, 0, 1, 1], [], []>} : vector<8x8xf32>, vector<8x8xf32>, vector<8x8xf32> -> vector<8x8xf32>
    %65 = arith.addf %63, %64 : vector<8x8xf32>
    %cst_51 = arith.constant 5.000000e-01 : f32
    %66 = vector.broadcast %cst_51 : f32 to vector<8x8xf32>
    %67 = arith.mulf %66, %65 : vector<8x8xf32>
    %68 = math.tanh %67 : vector<8x8xf32>
    %cst_52 = arith.constant 1.000000e+00 : f32
    %69 = vector.broadcast %cst_52 : f32 to vector<8x8xf32>
    %70 = arith.addf %68, %69 : vector<8x8xf32>
    %cst_53 = arith.constant 5.000000e-01 : f32
    %71 = vector.broadcast %cst_53 : f32 to vector<8x8xf32>
    %72 = arith.mulf %71, %70 : vector<8x8xf32>
    %73 = arith.mulf %58, %38 : vector<8x8xf32>
    %74 = arith.mulf %48, %62 : vector<8x8xf32>
    %75 = arith.addf %73, %74 : vector<8x8xf32>
    %76 = math.tanh %75 : vector<8x8xf32>
    %77 = arith.mulf %72, %76 : vector<8x8xf32>
    %78 = vector.extract_strided_slice %7 {offsets = [8, 0], sizes = [8, 8], strides = [1, 1]} : vector<128x8xf32> to vector<8x8xf32>
    %cst_54 = arith.constant dense<0.000000e+00> : vector<8x8xf32>
    %79 = tpu.matmul %77, %30, %cst_54 {dimension_numbers = #tpu.dot_dimension_numbers<[1], [0], [0], [1], [0, 0, 1, 1], [], []>} : vector<8x8xf32>, vector<8x8xf32>, vector<8x8xf32> -> vector<8x8xf32>
    %80 = arith.addf %78, %79 : vector<8x8xf32>
    %cst_55 = arith.constant 5.000000e-01 : f32
    %81 = vector.broadcast %cst_55 : f32 to vector<8x8xf32>
    %82 = arith.mulf %81, %80 : vector<8x8xf32>
    %83 = math.tanh %82 : vector<8x8xf32>
    %cst_56 = arith.constant 1.000000e+00 : f32
    %84 = vector.broadcast %cst_56 : f32 to vector<8x8xf32>
    %85 = arith.addf %83, %84 : vector<8x8xf32>
    %cst_57 = arith.constant 5.000000e-01 : f32
    %86 = vector.broadcast %cst_57 : f32 to vector<8x8xf32>
    %87 = arith.mulf %86, %85 : vector<8x8xf32>
    %88 = vector.extract_strided_slice %14 {offsets = [8, 0], sizes = [8, 8], strides = [1, 1]} : vector<128x8xf32> to vector<8x8xf32>
    %cst_58 = arith.constant dense<0.000000e+00> : vector<8x8xf32>
    %89 = tpu.matmul %77, %32, %cst_58 {dimension_numbers = #tpu.dot_dimension_numbers<[1], [0], [0], [1], [0, 0, 1, 1], [], []>} : vector<8x8xf32>, vector<8x8xf32>, vector<8x8xf32> -> vector<8x8xf32>
    %90 = arith.addf %88, %89 : vector<8x8xf32>
    %cst_59 = arith.constant 5.000000e-01 : f32
    %91 = vector.broadcast %cst_59 : f32 to vector<8x8xf32>
    %92 = arith.mulf %91, %90 : vector<8x8xf32>
    %93 = math.tanh %92 : vector<8x8xf32>
    %cst_60 = arith.constant 1.000000e+00 : f32
    %94 = vector.broadcast %cst_60 : f32 to vector<8x8xf32>
    %95 = arith.addf %93, %94 : vector<8x8xf32>
    %cst_61 = arith.constant 5.000000e-01 : f32
    %96 = vector.broadcast %cst_61 : f32 to vector<8x8xf32>
    %97 = arith.mulf %96, %95 : vector<8x8xf32>
    %98 = vector.extract_strided_slice %21 {offsets = [8, 0], sizes = [8, 8], strides = [1, 1]} : vector<128x8xf32> to vector<8x8xf32>
    %cst_62 = arith.constant dense<0.000000e+00> : vector<8x8xf32>
    %99 = tpu.matmul %77, %34, %cst_62 {dimension_numbers = #tpu.dot_dimension_numbers<[1], [0], [0], [1], [0, 0, 1, 1], [], []>} : vector<8x8xf32>, vector<8x8xf32>, vector<8x8xf32> -> vector<8x8xf32>
    %100 = arith.addf %98, %99 : vector<8x8xf32>
    %101 = math.tanh %100 : vector<8x8xf32>
    %102 = vector.extract_strided_slice %28 {offsets = [8, 0], sizes = [8, 8], strides = [1, 1]} : vector<128x8xf32> to vector<8x8xf32>
    %cst_63 = arith.constant dense<0.000000e+00> : vector<8x8xf32>
    %103 = tpu.matmul %77, %36, %cst_63 {dimension_numbers = #tpu.dot_dimension_numbers<[1], [0], [0], [1], [0, 0, 1, 1], [], []>} : vector<8x8xf32>, vector<8x8xf32>, vector<8x8xf32> -> vector<8x8xf32>
    %104 = arith.addf %102, %103 : vector<8x8xf32>
    %cst_64 = arith.constant 5.000000e-01 : f32
    %105 = vector.broadcast %cst_64 : f32 to vector<8x8xf32>
    %106 = arith.mulf %105, %104 : vector<8x8xf32>
    %107 = math.tanh %106 : vector<8x8xf32>
    %cst_65 = arith.constant 1.000000e+00 : f32
    %108 = vector.broadcast %cst_65 : f32 to vector<8x8xf32>
    %109 = arith.addf %107, %108 : vector<8x8xf32>
    %cst_66 = arith.constant 5.000000e-01 : f32
    %110 = vector.broadcast %cst_66 : f32 to vector<8x8xf32>
    %111 = arith.mulf %110, %109 : vector<8x8xf32>
    %112 = arith.mulf %97, %75 : vector<8x8xf32>
    %113 = arith.mulf %87, %101 : vector<8x8xf32>
    %114 = arith.addf %112, %113 : vector<8x8xf32>
    %115 = math.tanh %114 : vector<8x8xf32>
    %116 = arith.mulf %111, %115 : vector<8x8xf32>
    %117 = vector.extract_strided_slice %7 {offsets = [16, 0], sizes = [8, 8], strides = [1, 1]} : vector<128x8xf32> to vector<8x8xf32>
    %cst_67 = arith.constant dense<0.000000e+00> : vector<8x8xf32>
    %118 = tpu.matmul %116, %30, %cst_67 {dimension_numbers = #tpu.dot_dimension_numbers<[1], [0], [0], [1], [0, 0, 1, 1], [], []>} : vector<8x8xf32>, vector<8x8xf32>, vector<8x8xf32> -> vector<8x8xf32>
    %119 = arith.addf %117, %118 : vector<8x8xf32>
    %cst_68 = arith.constant 5.000000e-01 : f32
    %120 = vector.broadcast %cst_68 : f32 to vector<8x8xf32>
    %121 = arith.mulf %120, %119 : vector<8x8xf32>
    %122 = math.tanh %121 : vector<8x8xf32>
    %cst_69 = arith.constant 1.000000e+00 : f32
    %123 = vector.broadcast %cst_69 : f32 to vector<8x8xf32>
    %124 = arith.addf %122, %123 : vector<8x8xf32>
    %cst_70 = arith.constant 5.000000e-01 : f32
    %125 = vector.broadcast %cst_70 : f32 to vector<8x8xf32>
    %126 = arith.mulf %125, %124 : vector<8x8xf32>
    %127 = vector.extract_strided_slice %14 {offsets = [16, 0], sizes = [8, 8], strides = [1, 1]} : vector<128x8xf32> to vector<8x8xf32>
    %cst_71 = arith.constant dense<0.000000e+00> : vector<8x8xf32>
    %128 = tpu.matmul %116, %32, %cst_71 {dimension_numbers = #tpu.dot_dimension_numbers<[1], [0], [0], [1], [0, 0, 1, 1], [], []>} : vector<8x8xf32>, vector<8x8xf32>, vector<8x8xf32> -> vector<8x8xf32>
    %129 = arith.addf %127, %128 : vector<8x8xf32>
    %cst_72 = arith.constant 5.000000e-01 : f32
    %130 = vector.broadcast %cst_72 : f32 to vector<8x8xf32>
    %131 = arith.mulf %130, %129 : vector<8x8xf32>
    %132 = math.tanh %131 : vector<8x8xf32>
    %cst_73 = arith.constant 1.000000e+00 : f32
    %133 = vector.broadcast %cst_73 : f32 to vector<8x8xf32>
    %134 = arith.addf %132, %133 : vector<8x8xf32>
    %cst_74 = arith.constant 5.000000e-01 : f32
    %135 = vector.broadcast %cst_74 : f32 to vector<8x8xf32>
    %136 = arith.mulf %135, %134 : vector<8x8xf32>
    %137 = vector.extract_strided_slice %21 {offsets = [16, 0], sizes = [8, 8], strides = [1, 1]} : vector<128x8xf32> to vector<8x8xf32>
    %cst_75 = arith.constant dense<0.000000e+00> : vector<8x8xf32>
    %138 = tpu.matmul %116, %34, %cst_75 {dimension_numbers = #tpu.dot_dimension_numbers<[1], [0], [0], [1], [0, 0, 1, 1], [], []>} : vector<8x8xf32>, vector<8x8xf32>, vector<8x8xf32> -> vector<8x8xf32>
    %139 = arith.addf %137, %138 : vector<8x8xf32>
    %140 = math.tanh %139 : vector<8x8xf32>
    %141 = vector.extract_strided_slice %28 {offsets = [16, 0], sizes = [8, 8], strides = [1, 1]} : vector<128x8xf32> to vector<8x8xf32>
    %cst_76 = arith.constant dense<0.000000e+00> : vector<8x8xf32>
    %142 = tpu.matmul %116, %36, %cst_76 {dimension_numbers = #tpu.dot_dimension_numbers<[1], [0], [0], [1], [0, 0, 1, 1], [], []>} : vector<8x8xf32>, vector<8x8xf32>, vector<8x8xf32> -> vector<8x8xf32>
    %143 = arith.addf %141, %142 : vector<8x8xf32>
    %cst_77 = arith.constant 5.000000e-01 : f32
    %144 = vector.broadcast %cst_77 : f32 to vector<8x8xf32>
    %145 = arith.mulf %144, %143 : vector<8x8xf32>
    %146 = math.tanh %145 : vector<8x8xf32>
    %cst_78 = arith.constant 1.000000e+00 : f32
    %147 = vector.broadcast %cst_78 : f32 to vector<8x8xf32>
    %148 = arith.addf %146, %147 : vector<8x8xf32>
    %cst_79 = arith.constant 5.000000e-01 : f32
    %149 = vector.broadcast %cst_79 : f32 to vector<8x8xf32>
    %150 = arith.mulf %149, %148 : vector<8x8xf32>
    %151 = arith.mulf %136, %114 : vector<8x8xf32>
    %152 = arith.mulf %126, %140 : vector<8x8xf32>
    %153 = arith.addf %151, %152 : vector<8x8xf32>
    %154 = math.tanh %153 : vector<8x8xf32>
    %155 = arith.mulf %150, %154 : vector<8x8xf32>
    %156 = vector.extract_strided_slice %7 {offsets = [24, 0], sizes = [8, 8], strides = [1, 1]} : vector<128x8xf32> to vector<8x8xf32>
    %cst_80 = arith.constant dense<0.000000e+00> : vector<8x8xf32>
    %157 = tpu.matmul %155, %30, %cst_80 {dimension_numbers = #tpu.dot_dimension_numbers<[1], [0], [0], [1], [0, 0, 1, 1], [], []>} : vector<8x8xf32>, vector<8x8xf32>, vector<8x8xf32> -> vector<8x8xf32>
    %158 = arith.addf %156, %157 : vector<8x8xf32>
    %cst_81 = arith.constant 5.000000e-01 : f32
    %159 = vector.broadcast %cst_81 : f32 to vector<8x8xf32>
    %160 = arith.mulf %159, %158 : vector<8x8xf32>
    %161 = math.tanh %160 : vector<8x8xf32>
    %cst_82 = arith.constant 1.000000e+00 : f32
    %162 = vector.broadcast %cst_82 : f32 to vector<8x8xf32>
    %163 = arith.addf %161, %162 : vector<8x8xf32>
    %cst_83 = arith.constant 5.000000e-01 : f32
    %164 = vector.broadcast %cst_83 : f32 to vector<8x8xf32>
    %165 = arith.mulf %164, %163 : vector<8x8xf32>
    %166 = vector.extract_strided_slice %14 {offsets = [24, 0], sizes = [8, 8], strides = [1, 1]} : vector<128x8xf32> to vector<8x8xf32>
    %cst_84 = arith.constant dense<0.000000e+00> : vector<8x8xf32>
    %167 = tpu.matmul %155, %32, %cst_84 {dimension_numbers = #tpu.dot_dimension_numbers<[1], [0], [0], [1], [0, 0, 1, 1], [], []>} : vector<8x8xf32>, vector<8x8xf32>, vector<8x8xf32> -> vector<8x8xf32>
    %168 = arith.addf %166, %167 : vector<8x8xf32>
    %cst_85 = arith.constant 5.000000e-01 : f32
    %169 = vector.broadcast %cst_85 : f32 to vector<8x8xf32>
    %170 = arith.mulf %169, %168 : vector<8x8xf32>
    %171 = math.tanh %170 : vector<8x8xf32>
    %cst_86 = arith.constant 1.000000e+00 : f32
    %172 = vector.broadcast %cst_86 : f32 to vector<8x8xf32>
    %173 = arith.addf %171, %172 : vector<8x8xf32>
    %cst_87 = arith.constant 5.000000e-01 : f32
    %174 = vector.broadcast %cst_87 : f32 to vector<8x8xf32>
    %175 = arith.mulf %174, %173 : vector<8x8xf32>
    %176 = vector.extract_strided_slice %21 {offsets = [24, 0], sizes = [8, 8], strides = [1, 1]} : vector<128x8xf32> to vector<8x8xf32>
    %cst_88 = arith.constant dense<0.000000e+00> : vector<8x8xf32>
    %177 = tpu.matmul %155, %34, %cst_88 {dimension_numbers = #tpu.dot_dimension_numbers<[1], [0], [0], [1], [0, 0, 1, 1], [], []>} : vector<8x8xf32>, vector<8x8xf32>, vector<8x8xf32> -> vector<8x8xf32>
    %178 = arith.addf %176, %177 : vector<8x8xf32>
    %179 = math.tanh %178 : vector<8x8xf32>
    %180 = vector.extract_strided_slice %28 {offsets = [24, 0], sizes = [8, 8], strides = [1, 1]} : vector<128x8xf32> to vector<8x8xf32>
    %cst_89 = arith.constant dense<0.000000e+00> : vector<8x8xf32>
    %181 = tpu.matmul %155, %36, %cst_89 {dimension_numbers = #tpu.dot_dimension_numbers<[1], [0], [0], [1], [0, 0, 1, 1], [], []>} : vector<8x8xf32>, vector<8x8xf32>, vector<8x8xf32> -> vector<8x8xf32>
    %182 = arith.addf %180, %181 : vector<8x8xf32>
    %cst_90 = arith.constant 5.000000e-01 : f32
    %183 = vector.broadcast %cst_90 : f32 to vector<8x8xf32>
    %184 = arith.mulf %183, %182 : vector<8x8xf32>
    %185 = math.tanh %184 : vector<8x8xf32>
    %cst_91 = arith.constant 1.000000e+00 : f32
    %186 = vector.broadcast %cst_91 : f32 to vector<8x8xf32>
    %187 = arith.addf %185, %186 : vector<8x8xf32>
    %cst_92 = arith.constant 5.000000e-01 : f32
    %188 = vector.broadcast %cst_92 : f32 to vector<8x8xf32>
    %189 = arith.mulf %188, %187 : vector<8x8xf32>
    %190 = arith.mulf %175, %153 : vector<8x8xf32>
    %191 = arith.mulf %165, %179 : vector<8x8xf32>
    %192 = arith.addf %190, %191 : vector<8x8xf32>
    %193 = math.tanh %192 : vector<8x8xf32>
    %194 = arith.mulf %189, %193 : vector<8x8xf32>
    %195 = vector.extract_strided_slice %7 {offsets = [32, 0], sizes = [8, 8], strides = [1, 1]} : vector<128x8xf32> to vector<8x8xf32>
    %cst_93 = arith.constant dense<0.000000e+00> : vector<8x8xf32>
    %196 = tpu.matmul %194, %30, %cst_93 {dimension_numbers = #tpu.dot_dimension_numbers<[1], [0], [0], [1], [0, 0, 1, 1], [], []>} : vector<8x8xf32>, vector<8x8xf32>, vector<8x8xf32> -> vector<8x8xf32>
    %197 = arith.addf %195, %196 : vector<8x8xf32>
    %cst_94 = arith.constant 5.000000e-01 : f32
    %198 = vector.broadcast %cst_94 : f32 to vector<8x8xf32>
    %199 = arith.mulf %198, %197 : vector<8x8xf32>
    %200 = math.tanh %199 : vector<8x8xf32>
    %cst_95 = arith.constant 1.000000e+00 : f32
    %201 = vector.broadcast %cst_95 : f32 to vector<8x8xf32>
    %202 = arith.addf %200, %201 : vector<8x8xf32>
    %cst_96 = arith.constant 5.000000e-01 : f32
    %203 = vector.broadcast %cst_96 : f32 to vector<8x8xf32>
    %204 = arith.mulf %203, %202 : vector<8x8xf32>
    %205 = vector.extract_strided_slice %14 {offsets = [32, 0], sizes = [8, 8], strides = [1, 1]} : vector<128x8xf32> to vector<8x8xf32>
    %cst_97 = arith.constant dense<0.000000e+00> : vector<8x8xf32>
    %206 = tpu.matmul %194, %32, %cst_97 {dimension_numbers = #tpu.dot_dimension_numbers<[1], [0], [0], [1], [0, 0, 1, 1], [], []>} : vector<8x8xf32>, vector<8x8xf32>, vector<8x8xf32> -> vector<8x8xf32>
    %207 = arith.addf %205, %206 : vector<8x8xf32>
    %cst_98 = arith.constant 5.000000e-01 : f32
    %208 = vector.broadcast %cst_98 : f32 to vector<8x8xf32>
    %209 = arith.mulf %208, %207 : vector<8x8xf32>
    %210 = math.tanh %209 : vector<8x8xf32>
    %cst_99 = arith.constant 1.000000e+00 : f32
    %211 = vector.broadcast %cst_99 : f32 to vector<8x8xf32>
    %212 = arith.addf %210, %211 : vector<8x8xf32>
    %cst_100 = arith.constant 5.000000e-01 : f32
    %213 = vector.broadcast %cst_100 : f32 to vector<8x8xf32>
    %214 = arith.mulf %213, %212 : vector<8x8xf32>
    %215 = vector.extract_strided_slice %21 {offsets = [32, 0], sizes = [8, 8], strides = [1, 1]} : vector<128x8xf32> to vector<8x8xf32>
    %cst_101 = arith.constant dense<0.000000e+00> : vector<8x8xf32>
    %216 = tpu.matmul %194, %34, %cst_101 {dimension_numbers = #tpu.dot_dimension_numbers<[1], [0], [0], [1], [0, 0, 1, 1], [], []>} : vector<8x8xf32>, vector<8x8xf32>, vector<8x8xf32> -> vector<8x8xf32>
    %217 = arith.addf %215, %216 : vector<8x8xf32>
    %218 = math.tanh %217 : vector<8x8xf32>
    %219 = vector.extract_strided_slice %28 {offsets = [32, 0], sizes = [8, 8], strides = [1, 1]} : vector<128x8xf32> to vector<8x8xf32>
    %cst_102 = arith.constant dense<0.000000e+00> : vector<8x8xf32>
    %220 = tpu.matmul %194, %36, %cst_102 {dimension_numbers = #tpu.dot_dimension_numbers<[1], [0], [0], [1], [0, 0, 1, 1], [], []>} : vector<8x8xf32>, vector<8x8xf32>, vector<8x8xf32> -> vector<8x8xf32>
    %221 = arith.addf %219, %220 : vector<8x8xf32>
    %cst_103 = arith.constant 5.000000e-01 : f32
    %222 = vector.broadcast %cst_103 : f32 to vector<8x8xf32>
    %223 = arith.mulf %222, %221 : vector<8x8xf32>
    %224 = math.tanh %223 : vector<8x8xf32>
    %cst_104 = arith.constant 1.000000e+00 : f32
    %225 = vector.broadcast %cst_104 : f32 to vector<8x8xf32>
    %226 = arith.addf %224, %225 : vector<8x8xf32>
    %cst_105 = arith.constant 5.000000e-01 : f32
    %227 = vector.broadcast %cst_105 : f32 to vector<8x8xf32>
    %228 = arith.mulf %227, %226 : vector<8x8xf32>
    %229 = arith.mulf %214, %192 : vector<8x8xf32>
    %230 = arith.mulf %204, %218 : vector<8x8xf32>
    %231 = arith.addf %229, %230 : vector<8x8xf32>
    %232 = math.tanh %231 : vector<8x8xf32>
    %233 = arith.mulf %228, %232 : vector<8x8xf32>
    %234 = vector.extract_strided_slice %7 {offsets = [40, 0], sizes = [8, 8], strides = [1, 1]} : vector<128x8xf32> to vector<8x8xf32>
    %cst_106 = arith.constant dense<0.000000e+00> : vector<8x8xf32>
    %235 = tpu.matmul %233, %30, %cst_106 {dimension_numbers = #tpu.dot_dimension_numbers<[1], [0], [0], [1], [0, 0, 1, 1], [], []>} : vector<8x8xf32>, vector<8x8xf32>, vector<8x8xf32> -> vector<8x8xf32>
    %236 = arith.addf %234, %235 : vector<8x8xf32>
    %cst_107 = arith.constant 5.000000e-01 : f32
    %237 = vector.broadcast %cst_107 : f32 to vector<8x8xf32>
    %238 = arith.mulf %237, %236 : vector<8x8xf32>
    %239 = math.tanh %238 : vector<8x8xf32>
    %cst_108 = arith.constant 1.000000e+00 : f32
    %240 = vector.broadcast %cst_108 : f32 to vector<8x8xf32>
    %241 = arith.addf %239, %240 : vector<8x8xf32>
    %cst_109 = arith.constant 5.000000e-01 : f32
    %242 = vector.broadcast %cst_109 : f32 to vector<8x8xf32>
    %243 = arith.mulf %242, %241 : vector<8x8xf32>
    %244 = vector.extract_strided_slice %14 {offsets = [40, 0], sizes = [8, 8], strides = [1, 1]} : vector<128x8xf32> to vector<8x8xf32>
    %cst_110 = arith.constant dense<0.000000e+00> : vector<8x8xf32>
    %245 = tpu.matmul %233, %32, %cst_110 {dimension_numbers = #tpu.dot_dimension_numbers<[1], [0], [0], [1], [0, 0, 1, 1], [], []>} : vector<8x8xf32>, vector<8x8xf32>, vector<8x8xf32> -> vector<8x8xf32>
    %246 = arith.addf %244, %245 : vector<8x8xf32>
    %cst_111 = arith.constant 5.000000e-01 : f32
    %247 = vector.broadcast %cst_111 : f32 to vector<8x8xf32>
    %248 = arith.mulf %247, %246 : vector<8x8xf32>
    %249 = math.tanh %248 : vector<8x8xf32>
    %cst_112 = arith.constant 1.000000e+00 : f32
    %250 = vector.broadcast %cst_112 : f32 to vector<8x8xf32>
    %251 = arith.addf %249, %250 : vector<8x8xf32>
    %cst_113 = arith.constant 5.000000e-01 : f32
    %252 = vector.broadcast %cst_113 : f32 to vector<8x8xf32>
    %253 = arith.mulf %252, %251 : vector<8x8xf32>
    %254 = vector.extract_strided_slice %21 {offsets = [40, 0], sizes = [8, 8], strides = [1, 1]} : vector<128x8xf32> to vector<8x8xf32>
    %cst_114 = arith.constant dense<0.000000e+00> : vector<8x8xf32>
    %255 = tpu.matmul %233, %34, %cst_114 {dimension_numbers = #tpu.dot_dimension_numbers<[1], [0], [0], [1], [0, 0, 1, 1], [], []>} : vector<8x8xf32>, vector<8x8xf32>, vector<8x8xf32> -> vector<8x8xf32>
    %256 = arith.addf %254, %255 : vector<8x8xf32>
    %257 = math.tanh %256 : vector<8x8xf32>
    %258 = vector.extract_strided_slice %28 {offsets = [40, 0], sizes = [8, 8], strides = [1, 1]} : vector<128x8xf32> to vector<8x8xf32>
    %cst_115 = arith.constant dense<0.000000e+00> : vector<8x8xf32>
    %259 = tpu.matmul %233, %36, %cst_115 {dimension_numbers = #tpu.dot_dimension_numbers<[1], [0], [0], [1], [0, 0, 1, 1], [], []>} : vector<8x8xf32>, vector<8x8xf32>, vector<8x8xf32> -> vector<8x8xf32>
    %260 = arith.addf %258, %259 : vector<8x8xf32>
    %cst_116 = arith.constant 5.000000e-01 : f32
    %261 = vector.broadcast %cst_116 : f32 to vector<8x8xf32>
    %262 = arith.mulf %261, %260 : vector<8x8xf32>
    %263 = math.tanh %262 : vector<8x8xf32>
    %cst_117 = arith.constant 1.000000e+00 : f32
    %264 = vector.broadcast %cst_117 : f32 to vector<8x8xf32>
    %265 = arith.addf %263, %264 : vector<8x8xf32>
    %cst_118 = arith.constant 5.000000e-01 : f32
    %266 = vector.broadcast %cst_118 : f32 to vector<8x8xf32>
    %267 = arith.mulf %266, %265 : vector<8x8xf32>
    %268 = arith.mulf %253, %231 : vector<8x8xf32>
    %269 = arith.mulf %243, %257 : vector<8x8xf32>
    %270 = arith.addf %268, %269 : vector<8x8xf32>
    %271 = math.tanh %270 : vector<8x8xf32>
    %272 = arith.mulf %267, %271 : vector<8x8xf32>
    %273 = vector.extract_strided_slice %7 {offsets = [48, 0], sizes = [8, 8], strides = [1, 1]} : vector<128x8xf32> to vector<8x8xf32>
    %cst_119 = arith.constant dense<0.000000e+00> : vector<8x8xf32>
    %274 = tpu.matmul %272, %30, %cst_119 {dimension_numbers = #tpu.dot_dimension_numbers<[1], [0], [0], [1], [0, 0, 1, 1], [], []>} : vector<8x8xf32>, vector<8x8xf32>, vector<8x8xf32> -> vector<8x8xf32>
    %275 = arith.addf %273, %274 : vector<8x8xf32>
    %cst_120 = arith.constant 5.000000e-01 : f32
    %276 = vector.broadcast %cst_120 : f32 to vector<8x8xf32>
    %277 = arith.mulf %276, %275 : vector<8x8xf32>
    %278 = math.tanh %277 : vector<8x8xf32>
    %cst_121 = arith.constant 1.000000e+00 : f32
    %279 = vector.broadcast %cst_121 : f32 to vector<8x8xf32>
    %280 = arith.addf %278, %279 : vector<8x8xf32>
    %cst_122 = arith.constant 5.000000e-01 : f32
    %281 = vector.broadcast %cst_122 : f32 to vector<8x8xf32>
    %282 = arith.mulf %281, %280 : vector<8x8xf32>
    %283 = vector.extract_strided_slice %14 {offsets = [48, 0], sizes = [8, 8], strides = [1, 1]} : vector<128x8xf32> to vector<8x8xf32>
    %cst_123 = arith.constant dense<0.000000e+00> : vector<8x8xf32>
    %284 = tpu.matmul %272, %32, %cst_123 {dimension_numbers = #tpu.dot_dimension_numbers<[1], [0], [0], [1], [0, 0, 1, 1], [], []>} : vector<8x8xf32>, vector<8x8xf32>, vector<8x8xf32> -> vector<8x8xf32>
    %285 = arith.addf %283, %284 : vector<8x8xf32>
    %cst_124 = arith.constant 5.000000e-01 : f32
    %286 = vector.broadcast %cst_124 : f32 to vector<8x8xf32>
    %287 = arith.mulf %286, %285 : vector<8x8xf32>
    %288 = math.tanh %287 : vector<8x8xf32>
    %cst_125 = arith.constant 1.000000e+00 : f32
    %289 = vector.broadcast %cst_125 : f32 to vector<8x8xf32>
    %290 = arith.addf %288, %289 : vector<8x8xf32>
    %cst_126 = arith.constant 5.000000e-01 : f32
    %291 = vector.broadcast %cst_126 : f32 to vector<8x8xf32>
    %292 = arith.mulf %291, %290 : vector<8x8xf32>
    %293 = vector.extract_strided_slice %21 {offsets = [48, 0], sizes = [8, 8], strides = [1, 1]} : vector<128x8xf32> to vector<8x8xf32>
    %cst_127 = arith.constant dense<0.000000e+00> : vector<8x8xf32>
    %294 = tpu.matmul %272, %34, %cst_127 {dimension_numbers = #tpu.dot_dimension_numbers<[1], [0], [0], [1], [0, 0, 1, 1], [], []>} : vector<8x8xf32>, vector<8x8xf32>, vector<8x8xf32> -> vector<8x8xf32>
    %295 = arith.addf %293, %294 : vector<8x8xf32>
    %296 = math.tanh %295 : vector<8x8xf32>
    %297 = vector.extract_strided_slice %28 {offsets = [48, 0], sizes = [8, 8], strides = [1, 1]} : vector<128x8xf32> to vector<8x8xf32>
    %cst_128 = arith.constant dense<0.000000e+00> : vector<8x8xf32>
    %298 = tpu.matmul %272, %36, %cst_128 {dimension_numbers = #tpu.dot_dimension_numbers<[1], [0], [0], [1], [0, 0, 1, 1], [], []>} : vector<8x8xf32>, vector<8x8xf32>, vector<8x8xf32> -> vector<8x8xf32>
    %299 = arith.addf %297, %298 : vector<8x8xf32>
    %cst_129 = arith.constant 5.000000e-01 : f32
    %300 = vector.broadcast %cst_129 : f32 to vector<8x8xf32>
    %301 = arith.mulf %300, %299 : vector<8x8xf32>
    %302 = math.tanh %301 : vector<8x8xf32>
    %cst_130 = arith.constant 1.000000e+00 : f32
    %303 = vector.broadcast %cst_130 : f32 to vector<8x8xf32>
    %304 = arith.addf %302, %303 : vector<8x8xf32>
    %cst_131 = arith.constant 5.000000e-01 : f32
    %305 = vector.broadcast %cst_131 : f32 to vector<8x8xf32>
    %306 = arith.mulf %305, %304 : vector<8x8xf32>
    %307 = arith.mulf %292, %270 : vector<8x8xf32>
    %308 = arith.mulf %282, %296 : vector<8x8xf32>
    %309 = arith.addf %307, %308 : vector<8x8xf32>
    %310 = math.tanh %309 : vector<8x8xf32>
    %311 = arith.mulf %306, %310 : vector<8x8xf32>
    %312 = vector.extract_strided_slice %7 {offsets = [56, 0], sizes = [8, 8], strides = [1, 1]} : vector<128x8xf32> to vector<8x8xf32>
    %cst_132 = arith.constant dense<0.000000e+00> : vector<8x8xf32>
    %313 = tpu.matmul %311, %30, %cst_132 {dimension_numbers = #tpu.dot_dimension_numbers<[1], [0], [0], [1], [0, 0, 1, 1], [], []>} : vector<8x8xf32>, vector<8x8xf32>, vector<8x8xf32> -> vector<8x8xf32>
    %314 = arith.addf %312, %313 : vector<8x8xf32>
    %cst_133 = arith.constant 5.000000e-01 : f32
    %315 = vector.broadcast %cst_133 : f32 to vector<8x8xf32>
    %316 = arith.mulf %315, %314 : vector<8x8xf32>
    %317 = math.tanh %316 : vector<8x8xf32>
    %cst_134 = arith.constant 1.000000e+00 : f32
    %318 = vector.broadcast %cst_134 : f32 to vector<8x8xf32>
    %319 = arith.addf %317, %318 : vector<8x8xf32>
    %cst_135 = arith.constant 5.000000e-01 : f32
    %320 = vector.broadcast %cst_135 : f32 to vector<8x8xf32>
    %321 = arith.mulf %320, %319 : vector<8x8xf32>
    %322 = vector.extract_strided_slice %14 {offsets = [56, 0], sizes = [8, 8], strides = [1, 1]} : vector<128x8xf32> to vector<8x8xf32>
    %cst_136 = arith.constant dense<0.000000e+00> : vector<8x8xf32>
    %323 = tpu.matmul %311, %32, %cst_136 {dimension_numbers = #tpu.dot_dimension_numbers<[1], [0], [0], [1], [0, 0, 1, 1], [], []>} : vector<8x8xf32>, vector<8x8xf32>, vector<8x8xf32> -> vector<8x8xf32>
    %324 = arith.addf %322, %323 : vector<8x8xf32>
    %cst_137 = arith.constant 5.000000e-01 : f32
    %325 = vector.broadcast %cst_137 : f32 to vector<8x8xf32>
    %326 = arith.mulf %325, %324 : vector<8x8xf32>
    %327 = math.tanh %326 : vector<8x8xf32>
    %cst_138 = arith.constant 1.000000e+00 : f32
    %328 = vector.broadcast %cst_138 : f32 to vector<8x8xf32>
    %329 = arith.addf %327, %328 : vector<8x8xf32>
    %cst_139 = arith.constant 5.000000e-01 : f32
    %330 = vector.broadcast %cst_139 : f32 to vector<8x8xf32>
    %331 = arith.mulf %330, %329 : vector<8x8xf32>
    %332 = vector.extract_strided_slice %21 {offsets = [56, 0], sizes = [8, 8], strides = [1, 1]} : vector<128x8xf32> to vector<8x8xf32>
    %cst_140 = arith.constant dense<0.000000e+00> : vector<8x8xf32>
    %333 = tpu.matmul %311, %34, %cst_140 {dimension_numbers = #tpu.dot_dimension_numbers<[1], [0], [0], [1], [0, 0, 1, 1], [], []>} : vector<8x8xf32>, vector<8x8xf32>, vector<8x8xf32> -> vector<8x8xf32>
    %334 = arith.addf %332, %333 : vector<8x8xf32>
    %335 = math.tanh %334 : vector<8x8xf32>
    %336 = vector.extract_strided_slice %28 {offsets = [56, 0], sizes = [8, 8], strides = [1, 1]} : vector<128x8xf32> to vector<8x8xf32>
    %cst_141 = arith.constant dense<0.000000e+00> : vector<8x8xf32>
    %337 = tpu.matmul %311, %36, %cst_141 {dimension_numbers = #tpu.dot_dimension_numbers<[1], [0], [0], [1], [0, 0, 1, 1], [], []>} : vector<8x8xf32>, vector<8x8xf32>, vector<8x8xf32> -> vector<8x8xf32>
    %338 = arith.addf %336, %337 : vector<8x8xf32>
    %cst_142 = arith.constant 5.000000e-01 : f32
    %339 = vector.broadcast %cst_142 : f32 to vector<8x8xf32>
    %340 = arith.mulf %339, %338 : vector<8x8xf32>
    %341 = math.tanh %340 : vector<8x8xf32>
    %cst_143 = arith.constant 1.000000e+00 : f32
    %342 = vector.broadcast %cst_143 : f32 to vector<8x8xf32>
    %343 = arith.addf %341, %342 : vector<8x8xf32>
    %cst_144 = arith.constant 5.000000e-01 : f32
    %344 = vector.broadcast %cst_144 : f32 to vector<8x8xf32>
    %345 = arith.mulf %344, %343 : vector<8x8xf32>
    %346 = arith.mulf %331, %309 : vector<8x8xf32>
    %347 = arith.mulf %321, %335 : vector<8x8xf32>
    %348 = arith.addf %346, %347 : vector<8x8xf32>
    %349 = math.tanh %348 : vector<8x8xf32>
    %350 = arith.mulf %345, %349 : vector<8x8xf32>
    %351 = vector.extract_strided_slice %7 {offsets = [64, 0], sizes = [8, 8], strides = [1, 1]} : vector<128x8xf32> to vector<8x8xf32>
    %cst_145 = arith.constant dense<0.000000e+00> : vector<8x8xf32>
    %352 = tpu.matmul %350, %30, %cst_145 {dimension_numbers = #tpu.dot_dimension_numbers<[1], [0], [0], [1], [0, 0, 1, 1], [], []>} : vector<8x8xf32>, vector<8x8xf32>, vector<8x8xf32> -> vector<8x8xf32>
    %353 = arith.addf %351, %352 : vector<8x8xf32>
    %cst_146 = arith.constant 5.000000e-01 : f32
    %354 = vector.broadcast %cst_146 : f32 to vector<8x8xf32>
    %355 = arith.mulf %354, %353 : vector<8x8xf32>
    %356 = math.tanh %355 : vector<8x8xf32>
    %cst_147 = arith.constant 1.000000e+00 : f32
    %357 = vector.broadcast %cst_147 : f32 to vector<8x8xf32>
    %358 = arith.addf %356, %357 : vector<8x8xf32>
    %cst_148 = arith.constant 5.000000e-01 : f32
    %359 = vector.broadcast %cst_148 : f32 to vector<8x8xf32>
    %360 = arith.mulf %359, %358 : vector<8x8xf32>
    %361 = vector.extract_strided_slice %14 {offsets = [64, 0], sizes = [8, 8], strides = [1, 1]} : vector<128x8xf32> to vector<8x8xf32>
    %cst_149 = arith.constant dense<0.000000e+00> : vector<8x8xf32>
    %362 = tpu.matmul %350, %32, %cst_149 {dimension_numbers = #tpu.dot_dimension_numbers<[1], [0], [0], [1], [0, 0, 1, 1], [], []>} : vector<8x8xf32>, vector<8x8xf32>, vector<8x8xf32> -> vector<8x8xf32>
    %363 = arith.addf %361, %362 : vector<8x8xf32>
    %cst_150 = arith.constant 5.000000e-01 : f32
    %364 = vector.broadcast %cst_150 : f32 to vector<8x8xf32>
    %365 = arith.mulf %364, %363 : vector<8x8xf32>
    %366 = math.tanh %365 : vector<8x8xf32>
    %cst_151 = arith.constant 1.000000e+00 : f32
    %367 = vector.broadcast %cst_151 : f32 to vector<8x8xf32>
    %368 = arith.addf %366, %367 : vector<8x8xf32>
    %cst_152 = arith.constant 5.000000e-01 : f32
    %369 = vector.broadcast %cst_152 : f32 to vector<8x8xf32>
    %370 = arith.mulf %369, %368 : vector<8x8xf32>
    %371 = vector.extract_strided_slice %21 {offsets = [64, 0], sizes = [8, 8], strides = [1, 1]} : vector<128x8xf32> to vector<8x8xf32>
    %cst_153 = arith.constant dense<0.000000e+00> : vector<8x8xf32>
    %372 = tpu.matmul %350, %34, %cst_153 {dimension_numbers = #tpu.dot_dimension_numbers<[1], [0], [0], [1], [0, 0, 1, 1], [], []>} : vector<8x8xf32>, vector<8x8xf32>, vector<8x8xf32> -> vector<8x8xf32>
    %373 = arith.addf %371, %372 : vector<8x8xf32>
    %374 = math.tanh %373 : vector<8x8xf32>
    %375 = vector.extract_strided_slice %28 {offsets = [64, 0], sizes = [8, 8], strides = [1, 1]} : vector<128x8xf32> to vector<8x8xf32>
    %cst_154 = arith.constant dense<0.000000e+00> : vector<8x8xf32>
    %376 = tpu.matmul %350, %36, %cst_154 {dimension_numbers = #tpu.dot_dimension_numbers<[1], [0], [0], [1], [0, 0, 1, 1], [], []>} : vector<8x8xf32>, vector<8x8xf32>, vector<8x8xf32> -> vector<8x8xf32>
    %377 = arith.addf %375, %376 : vector<8x8xf32>
    %cst_155 = arith.constant 5.000000e-01 : f32
    %378 = vector.broadcast %cst_155 : f32 to vector<8x8xf32>
    %379 = arith.mulf %378, %377 : vector<8x8xf32>
    %380 = math.tanh %379 : vector<8x8xf32>
    %cst_156 = arith.constant 1.000000e+00 : f32
    %381 = vector.broadcast %cst_156 : f32 to vector<8x8xf32>
    %382 = arith.addf %380, %381 : vector<8x8xf32>
    %cst_157 = arith.constant 5.000000e-01 : f32
    %383 = vector.broadcast %cst_157 : f32 to vector<8x8xf32>
    %384 = arith.mulf %383, %382 : vector<8x8xf32>
    %385 = arith.mulf %370, %348 : vector<8x8xf32>
    %386 = arith.mulf %360, %374 : vector<8x8xf32>
    %387 = arith.addf %385, %386 : vector<8x8xf32>
    %388 = math.tanh %387 : vector<8x8xf32>
    %389 = arith.mulf %384, %388 : vector<8x8xf32>
    %390 = vector.extract_strided_slice %7 {offsets = [72, 0], sizes = [8, 8], strides = [1, 1]} : vector<128x8xf32> to vector<8x8xf32>
    %cst_158 = arith.constant dense<0.000000e+00> : vector<8x8xf32>
    %391 = tpu.matmul %389, %30, %cst_158 {dimension_numbers = #tpu.dot_dimension_numbers<[1], [0], [0], [1], [0, 0, 1, 1], [], []>} : vector<8x8xf32>, vector<8x8xf32>, vector<8x8xf32> -> vector<8x8xf32>
    %392 = arith.addf %390, %391 : vector<8x8xf32>
    %cst_159 = arith.constant 5.000000e-01 : f32
    %393 = vector.broadcast %cst_159 : f32 to vector<8x8xf32>
    %394 = arith.mulf %393, %392 : vector<8x8xf32>
    %395 = math.tanh %394 : vector<8x8xf32>
    %cst_160 = arith.constant 1.000000e+00 : f32
    %396 = vector.broadcast %cst_160 : f32 to vector<8x8xf32>
    %397 = arith.addf %395, %396 : vector<8x8xf32>
    %cst_161 = arith.constant 5.000000e-01 : f32
    %398 = vector.broadcast %cst_161 : f32 to vector<8x8xf32>
    %399 = arith.mulf %398, %397 : vector<8x8xf32>
    %400 = vector.extract_strided_slice %14 {offsets = [72, 0], sizes = [8, 8], strides = [1, 1]} : vector<128x8xf32> to vector<8x8xf32>
    %cst_162 = arith.constant dense<0.000000e+00> : vector<8x8xf32>
    %401 = tpu.matmul %389, %32, %cst_162 {dimension_numbers = #tpu.dot_dimension_numbers<[1], [0], [0], [1], [0, 0, 1, 1], [], []>} : vector<8x8xf32>, vector<8x8xf32>, vector<8x8xf32> -> vector<8x8xf32>
    %402 = arith.addf %400, %401 : vector<8x8xf32>
    %cst_163 = arith.constant 5.000000e-01 : f32
    %403 = vector.broadcast %cst_163 : f32 to vector<8x8xf32>
    %404 = arith.mulf %403, %402 : vector<8x8xf32>
    %405 = math.tanh %404 : vector<8x8xf32>
    %cst_164 = arith.constant 1.000000e+00 : f32
    %406 = vector.broadcast %cst_164 : f32 to vector<8x8xf32>
    %407 = arith.addf %405, %406 : vector<8x8xf32>
    %cst_165 = arith.constant 5.000000e-01 : f32
    %408 = vector.broadcast %cst_165 : f32 to vector<8x8xf32>
    %409 = arith.mulf %408, %407 : vector<8x8xf32>
    %410 = vector.extract_strided_slice %21 {offsets = [72, 0], sizes = [8, 8], strides = [1, 1]} : vector<128x8xf32> to vector<8x8xf32>
    %cst_166 = arith.constant dense<0.000000e+00> : vector<8x8xf32>
    %411 = tpu.matmul %389, %34, %cst_166 {dimension_numbers = #tpu.dot_dimension_numbers<[1], [0], [0], [1], [0, 0, 1, 1], [], []>} : vector<8x8xf32>, vector<8x8xf32>, vector<8x8xf32> -> vector<8x8xf32>
    %412 = arith.addf %410, %411 : vector<8x8xf32>
    %413 = math.tanh %412 : vector<8x8xf32>
    %414 = vector.extract_strided_slice %28 {offsets = [72, 0], sizes = [8, 8], strides = [1, 1]} : vector<128x8xf32> to vector<8x8xf32>
    %cst_167 = arith.constant dense<0.000000e+00> : vector<8x8xf32>
    %415 = tpu.matmul %389, %36, %cst_167 {dimension_numbers = #tpu.dot_dimension_numbers<[1], [0], [0], [1], [0, 0, 1, 1], [], []>} : vector<8x8xf32>, vector<8x8xf32>, vector<8x8xf32> -> vector<8x8xf32>
    %416 = arith.addf %414, %415 : vector<8x8xf32>
    %cst_168 = arith.constant 5.000000e-01 : f32
    %417 = vector.broadcast %cst_168 : f32 to vector<8x8xf32>
    %418 = arith.mulf %417, %416 : vector<8x8xf32>
    %419 = math.tanh %418 : vector<8x8xf32>
    %cst_169 = arith.constant 1.000000e+00 : f32
    %420 = vector.broadcast %cst_169 : f32 to vector<8x8xf32>
    %421 = arith.addf %419, %420 : vector<8x8xf32>
    %cst_170 = arith.constant 5.000000e-01 : f32
    %422 = vector.broadcast %cst_170 : f32 to vector<8x8xf32>
    %423 = arith.mulf %422, %421 : vector<8x8xf32>
    %424 = arith.mulf %409, %387 : vector<8x8xf32>
    %425 = arith.mulf %399, %413 : vector<8x8xf32>
    %426 = arith.addf %424, %425 : vector<8x8xf32>
    %427 = math.tanh %426 : vector<8x8xf32>
    %428 = arith.mulf %423, %427 : vector<8x8xf32>
    %429 = vector.extract_strided_slice %7 {offsets = [80, 0], sizes = [8, 8], strides = [1, 1]} : vector<128x8xf32> to vector<8x8xf32>
    %cst_171 = arith.constant dense<0.000000e+00> : vector<8x8xf32>
    %430 = tpu.matmul %428, %30, %cst_171 {dimension_numbers = #tpu.dot_dimension_numbers<[1], [0], [0], [1], [0, 0, 1, 1], [], []>} : vector<8x8xf32>, vector<8x8xf32>, vector<8x8xf32> -> vector<8x8xf32>
    %431 = arith.addf %429, %430 : vector<8x8xf32>
    %cst_172 = arith.constant 5.000000e-01 : f32
    %432 = vector.broadcast %cst_172 : f32 to vector<8x8xf32>
    %433 = arith.mulf %432, %431 : vector<8x8xf32>
    %434 = math.tanh %433 : vector<8x8xf32>
    %cst_173 = arith.constant 1.000000e+00 : f32
    %435 = vector.broadcast %cst_173 : f32 to vector<8x8xf32>
    %436 = arith.addf %434, %435 : vector<8x8xf32>
    %cst_174 = arith.constant 5.000000e-01 : f32
    %437 = vector.broadcast %cst_174 : f32 to vector<8x8xf32>
    %438 = arith.mulf %437, %436 : vector<8x8xf32>
    %439 = vector.extract_strided_slice %14 {offsets = [80, 0], sizes = [8, 8], strides = [1, 1]} : vector<128x8xf32> to vector<8x8xf32>
    %cst_175 = arith.constant dense<0.000000e+00> : vector<8x8xf32>
    %440 = tpu.matmul %428, %32, %cst_175 {dimension_numbers = #tpu.dot_dimension_numbers<[1], [0], [0], [1], [0, 0, 1, 1], [], []>} : vector<8x8xf32>, vector<8x8xf32>, vector<8x8xf32> -> vector<8x8xf32>
    %441 = arith.addf %439, %440 : vector<8x8xf32>
    %cst_176 = arith.constant 5.000000e-01 : f32
    %442 = vector.broadcast %cst_176 : f32 to vector<8x8xf32>
    %443 = arith.mulf %442, %441 : vector<8x8xf32>
    %444 = math.tanh %443 : vector<8x8xf32>
    %cst_177 = arith.constant 1.000000e+00 : f32
    %445 = vector.broadcast %cst_177 : f32 to vector<8x8xf32>
    %446 = arith.addf %444, %445 : vector<8x8xf32>
    %cst_178 = arith.constant 5.000000e-01 : f32
    %447 = vector.broadcast %cst_178 : f32 to vector<8x8xf32>
    %448 = arith.mulf %447, %446 : vector<8x8xf32>
    %449 = vector.extract_strided_slice %21 {offsets = [80, 0], sizes = [8, 8], strides = [1, 1]} : vector<128x8xf32> to vector<8x8xf32>
    %cst_179 = arith.constant dense<0.000000e+00> : vector<8x8xf32>
    %450 = tpu.matmul %428, %34, %cst_179 {dimension_numbers = #tpu.dot_dimension_numbers<[1], [0], [0], [1], [0, 0, 1, 1], [], []>} : vector<8x8xf32>, vector<8x8xf32>, vector<8x8xf32> -> vector<8x8xf32>
    %451 = arith.addf %449, %450 : vector<8x8xf32>
    %452 = math.tanh %451 : vector<8x8xf32>
    %453 = vector.extract_strided_slice %28 {offsets = [80, 0], sizes = [8, 8], strides = [1, 1]} : vector<128x8xf32> to vector<8x8xf32>
    %cst_180 = arith.constant dense<0.000000e+00> : vector<8x8xf32>
    %454 = tpu.matmul %428, %36, %cst_180 {dimension_numbers = #tpu.dot_dimension_numbers<[1], [0], [0], [1], [0, 0, 1, 1], [], []>} : vector<8x8xf32>, vector<8x8xf32>, vector<8x8xf32> -> vector<8x8xf32>
    %455 = arith.addf %453, %454 : vector<8x8xf32>
    %cst_181 = arith.constant 5.000000e-01 : f32
    %456 = vector.broadcast %cst_181 : f32 to vector<8x8xf32>
    %457 = arith.mulf %456, %455 : vector<8x8xf32>
    %458 = math.tanh %457 : vector<8x8xf32>
    %cst_182 = arith.constant 1.000000e+00 : f32
    %459 = vector.broadcast %cst_182 : f32 to vector<8x8xf32>
    %460 = arith.addf %458, %459 : vector<8x8xf32>
    %cst_183 = arith.constant 5.000000e-01 : f32
    %461 = vector.broadcast %cst_183 : f32 to vector<8x8xf32>
    %462 = arith.mulf %461, %460 : vector<8x8xf32>
    %463 = arith.mulf %448, %426 : vector<8x8xf32>
    %464 = arith.mulf %438, %452 : vector<8x8xf32>
    %465 = arith.addf %463, %464 : vector<8x8xf32>
    %466 = math.tanh %465 : vector<8x8xf32>
    %467 = arith.mulf %462, %466 : vector<8x8xf32>
    %468 = vector.extract_strided_slice %7 {offsets = [88, 0], sizes = [8, 8], strides = [1, 1]} : vector<128x8xf32> to vector<8x8xf32>
    %cst_184 = arith.constant dense<0.000000e+00> : vector<8x8xf32>
    %469 = tpu.matmul %467, %30, %cst_184 {dimension_numbers = #tpu.dot_dimension_numbers<[1], [0], [0], [1], [0, 0, 1, 1], [], []>} : vector<8x8xf32>, vector<8x8xf32>, vector<8x8xf32> -> vector<8x8xf32>
    %470 = arith.addf %468, %469 : vector<8x8xf32>
    %cst_185 = arith.constant 5.000000e-01 : f32
    %471 = vector.broadcast %cst_185 : f32 to vector<8x8xf32>
    %472 = arith.mulf %471, %470 : vector<8x8xf32>
    %473 = math.tanh %472 : vector<8x8xf32>
    %cst_186 = arith.constant 1.000000e+00 : f32
    %474 = vector.broadcast %cst_186 : f32 to vector<8x8xf32>
    %475 = arith.addf %473, %474 : vector<8x8xf32>
    %cst_187 = arith.constant 5.000000e-01 : f32
    %476 = vector.broadcast %cst_187 : f32 to vector<8x8xf32>
    %477 = arith.mulf %476, %475 : vector<8x8xf32>
    %478 = vector.extract_strided_slice %14 {offsets = [88, 0], sizes = [8, 8], strides = [1, 1]} : vector<128x8xf32> to vector<8x8xf32>
    %cst_188 = arith.constant dense<0.000000e+00> : vector<8x8xf32>
    %479 = tpu.matmul %467, %32, %cst_188 {dimension_numbers = #tpu.dot_dimension_numbers<[1], [0], [0], [1], [0, 0, 1, 1], [], []>} : vector<8x8xf32>, vector<8x8xf32>, vector<8x8xf32> -> vector<8x8xf32>
    %480 = arith.addf %478, %479 : vector<8x8xf32>
    %cst_189 = arith.constant 5.000000e-01 : f32
    %481 = vector.broadcast %cst_189 : f32 to vector<8x8xf32>
    %482 = arith.mulf %481, %480 : vector<8x8xf32>
    %483 = math.tanh %482 : vector<8x8xf32>
    %cst_190 = arith.constant 1.000000e+00 : f32
    %484 = vector.broadcast %cst_190 : f32 to vector<8x8xf32>
    %485 = arith.addf %483, %484 : vector<8x8xf32>
    %cst_191 = arith.constant 5.000000e-01 : f32
    %486 = vector.broadcast %cst_191 : f32 to vector<8x8xf32>
    %487 = arith.mulf %486, %485 : vector<8x8xf32>
    %488 = vector.extract_strided_slice %21 {offsets = [88, 0], sizes = [8, 8], strides = [1, 1]} : vector<128x8xf32> to vector<8x8xf32>
    %cst_192 = arith.constant dense<0.000000e+00> : vector<8x8xf32>
    %489 = tpu.matmul %467, %34, %cst_192 {dimension_numbers = #tpu.dot_dimension_numbers<[1], [0], [0], [1], [0, 0, 1, 1], [], []>} : vector<8x8xf32>, vector<8x8xf32>, vector<8x8xf32> -> vector<8x8xf32>
    %490 = arith.addf %488, %489 : vector<8x8xf32>
    %491 = math.tanh %490 : vector<8x8xf32>
    %492 = vector.extract_strided_slice %28 {offsets = [88, 0], sizes = [8, 8], strides = [1, 1]} : vector<128x8xf32> to vector<8x8xf32>
    %cst_193 = arith.constant dense<0.000000e+00> : vector<8x8xf32>
    %493 = tpu.matmul %467, %36, %cst_193 {dimension_numbers = #tpu.dot_dimension_numbers<[1], [0], [0], [1], [0, 0, 1, 1], [], []>} : vector<8x8xf32>, vector<8x8xf32>, vector<8x8xf32> -> vector<8x8xf32>
    %494 = arith.addf %492, %493 : vector<8x8xf32>
    %cst_194 = arith.constant 5.000000e-01 : f32
    %495 = vector.broadcast %cst_194 : f32 to vector<8x8xf32>
    %496 = arith.mulf %495, %494 : vector<8x8xf32>
    %497 = math.tanh %496 : vector<8x8xf32>
    %cst_195 = arith.constant 1.000000e+00 : f32
    %498 = vector.broadcast %cst_195 : f32 to vector<8x8xf32>
    %499 = arith.addf %497, %498 : vector<8x8xf32>
    %cst_196 = arith.constant 5.000000e-01 : f32
    %500 = vector.broadcast %cst_196 : f32 to vector<8x8xf32>
    %501 = arith.mulf %500, %499 : vector<8x8xf32>
    %502 = arith.mulf %487, %465 : vector<8x8xf32>
    %503 = arith.mulf %477, %491 : vector<8x8xf32>
    %504 = arith.addf %502, %503 : vector<8x8xf32>
    %505 = math.tanh %504 : vector<8x8xf32>
    %506 = arith.mulf %501, %505 : vector<8x8xf32>
    %507 = vector.extract_strided_slice %7 {offsets = [96, 0], sizes = [8, 8], strides = [1, 1]} : vector<128x8xf32> to vector<8x8xf32>
    %cst_197 = arith.constant dense<0.000000e+00> : vector<8x8xf32>
    %508 = tpu.matmul %506, %30, %cst_197 {dimension_numbers = #tpu.dot_dimension_numbers<[1], [0], [0], [1], [0, 0, 1, 1], [], []>} : vector<8x8xf32>, vector<8x8xf32>, vector<8x8xf32> -> vector<8x8xf32>
    %509 = arith.addf %507, %508 : vector<8x8xf32>
    %cst_198 = arith.constant 5.000000e-01 : f32
    %510 = vector.broadcast %cst_198 : f32 to vector<8x8xf32>
    %511 = arith.mulf %510, %509 : vector<8x8xf32>
    %512 = math.tanh %511 : vector<8x8xf32>
    %cst_199 = arith.constant 1.000000e+00 : f32
    %513 = vector.broadcast %cst_199 : f32 to vector<8x8xf32>
    %514 = arith.addf %512, %513 : vector<8x8xf32>
    %cst_200 = arith.constant 5.000000e-01 : f32
    %515 = vector.broadcast %cst_200 : f32 to vector<8x8xf32>
    %516 = arith.mulf %515, %514 : vector<8x8xf32>
    %517 = vector.extract_strided_slice %14 {offsets = [96, 0], sizes = [8, 8], strides = [1, 1]} : vector<128x8xf32> to vector<8x8xf32>
    %cst_201 = arith.constant dense<0.000000e+00> : vector<8x8xf32>
    %518 = tpu.matmul %506, %32, %cst_201 {dimension_numbers = #tpu.dot_dimension_numbers<[1], [0], [0], [1], [0, 0, 1, 1], [], []>} : vector<8x8xf32>, vector<8x8xf32>, vector<8x8xf32> -> vector<8x8xf32>
    %519 = arith.addf %517, %518 : vector<8x8xf32>
    %cst_202 = arith.constant 5.000000e-01 : f32
    %520 = vector.broadcast %cst_202 : f32 to vector<8x8xf32>
    %521 = arith.mulf %520, %519 : vector<8x8xf32>
    %522 = math.tanh %521 : vector<8x8xf32>
    %cst_203 = arith.constant 1.000000e+00 : f32
    %523 = vector.broadcast %cst_203 : f32 to vector<8x8xf32>
    %524 = arith.addf %522, %523 : vector<8x8xf32>
    %cst_204 = arith.constant 5.000000e-01 : f32
    %525 = vector.broadcast %cst_204 : f32 to vector<8x8xf32>
    %526 = arith.mulf %525, %524 : vector<8x8xf32>
    %527 = vector.extract_strided_slice %21 {offsets = [96, 0], sizes = [8, 8], strides = [1, 1]} : vector<128x8xf32> to vector<8x8xf32>
    %cst_205 = arith.constant dense<0.000000e+00> : vector<8x8xf32>
    %528 = tpu.matmul %506, %34, %cst_205 {dimension_numbers = #tpu.dot_dimension_numbers<[1], [0], [0], [1], [0, 0, 1, 1], [], []>} : vector<8x8xf32>, vector<8x8xf32>, vector<8x8xf32> -> vector<8x8xf32>
    %529 = arith.addf %527, %528 : vector<8x8xf32>
    %530 = math.tanh %529 : vector<8x8xf32>
    %531 = vector.extract_strided_slice %28 {offsets = [96, 0], sizes = [8, 8], strides = [1, 1]} : vector<128x8xf32> to vector<8x8xf32>
    %cst_206 = arith.constant dense<0.000000e+00> : vector<8x8xf32>
    %532 = tpu.matmul %506, %36, %cst_206 {dimension_numbers = #tpu.dot_dimension_numbers<[1], [0], [0], [1], [0, 0, 1, 1], [], []>} : vector<8x8xf32>, vector<8x8xf32>, vector<8x8xf32> -> vector<8x8xf32>
    %533 = arith.addf %531, %532 : vector<8x8xf32>
    %cst_207 = arith.constant 5.000000e-01 : f32
    %534 = vector.broadcast %cst_207 : f32 to vector<8x8xf32>
    %535 = arith.mulf %534, %533 : vector<8x8xf32>
    %536 = math.tanh %535 : vector<8x8xf32>
    %cst_208 = arith.constant 1.000000e+00 : f32
    %537 = vector.broadcast %cst_208 : f32 to vector<8x8xf32>
    %538 = arith.addf %536, %537 : vector<8x8xf32>
    %cst_209 = arith.constant 5.000000e-01 : f32
    %539 = vector.broadcast %cst_209 : f32 to vector<8x8xf32>
    %540 = arith.mulf %539, %538 : vector<8x8xf32>
    %541 = arith.mulf %526, %504 : vector<8x8xf32>
    %542 = arith.mulf %516, %530 : vector<8x8xf32>
    %543 = arith.addf %541, %542 : vector<8x8xf32>
    %544 = math.tanh %543 : vector<8x8xf32>
    %545 = arith.mulf %540, %544 : vector<8x8xf32>
    %546 = vector.extract_strided_slice %7 {offsets = [104, 0], sizes = [8, 8], strides = [1, 1]} : vector<128x8xf32> to vector<8x8xf32>
    %cst_210 = arith.constant dense<0.000000e+00> : vector<8x8xf32>
    %547 = tpu.matmul %545, %30, %cst_210 {dimension_numbers = #tpu.dot_dimension_numbers<[1], [0], [0], [1], [0, 0, 1, 1], [], []>} : vector<8x8xf32>, vector<8x8xf32>, vector<8x8xf32> -> vector<8x8xf32>
    %548 = arith.addf %546, %547 : vector<8x8xf32>
    %cst_211 = arith.constant 5.000000e-01 : f32
    %549 = vector.broadcast %cst_211 : f32 to vector<8x8xf32>
    %550 = arith.mulf %549, %548 : vector<8x8xf32>
    %551 = math.tanh %550 : vector<8x8xf32>
    %cst_212 = arith.constant 1.000000e+00 : f32
    %552 = vector.broadcast %cst_212 : f32 to vector<8x8xf32>
    %553 = arith.addf %551, %552 : vector<8x8xf32>
    %cst_213 = arith.constant 5.000000e-01 : f32
    %554 = vector.broadcast %cst_213 : f32 to vector<8x8xf32>
    %555 = arith.mulf %554, %553 : vector<8x8xf32>
    %556 = vector.extract_strided_slice %14 {offsets = [104, 0], sizes = [8, 8], strides = [1, 1]} : vector<128x8xf32> to vector<8x8xf32>
    %cst_214 = arith.constant dense<0.000000e+00> : vector<8x8xf32>
    %557 = tpu.matmul %545, %32, %cst_214 {dimension_numbers = #tpu.dot_dimension_numbers<[1], [0], [0], [1], [0, 0, 1, 1], [], []>} : vector<8x8xf32>, vector<8x8xf32>, vector<8x8xf32> -> vector<8x8xf32>
    %558 = arith.addf %556, %557 : vector<8x8xf32>
    %cst_215 = arith.constant 5.000000e-01 : f32
    %559 = vector.broadcast %cst_215 : f32 to vector<8x8xf32>
    %560 = arith.mulf %559, %558 : vector<8x8xf32>
    %561 = math.tanh %560 : vector<8x8xf32>
    %cst_216 = arith.constant 1.000000e+00 : f32
    %562 = vector.broadcast %cst_216 : f32 to vector<8x8xf32>
    %563 = arith.addf %561, %562 : vector<8x8xf32>
    %cst_217 = arith.constant 5.000000e-01 : f32
    %564 = vector.broadcast %cst_217 : f32 to vector<8x8xf32>
    %565 = arith.mulf %564, %563 : vector<8x8xf32>
    %566 = vector.extract_strided_slice %21 {offsets = [104, 0], sizes = [8, 8], strides = [1, 1]} : vector<128x8xf32> to vector<8x8xf32>
    %cst_218 = arith.constant dense<0.000000e+00> : vector<8x8xf32>
    %567 = tpu.matmul %545, %34, %cst_218 {dimension_numbers = #tpu.dot_dimension_numbers<[1], [0], [0], [1], [0, 0, 1, 1], [], []>} : vector<8x8xf32>, vector<8x8xf32>, vector<8x8xf32> -> vector<8x8xf32>
    %568 = arith.addf %566, %567 : vector<8x8xf32>
    %569 = math.tanh %568 : vector<8x8xf32>
    %570 = vector.extract_strided_slice %28 {offsets = [104, 0], sizes = [8, 8], strides = [1, 1]} : vector<128x8xf32> to vector<8x8xf32>
    %cst_219 = arith.constant dense<0.000000e+00> : vector<8x8xf32>
    %571 = tpu.matmul %545, %36, %cst_219 {dimension_numbers = #tpu.dot_dimension_numbers<[1], [0], [0], [1], [0, 0, 1, 1], [], []>} : vector<8x8xf32>, vector<8x8xf32>, vector<8x8xf32> -> vector<8x8xf32>
    %572 = arith.addf %570, %571 : vector<8x8xf32>
    %cst_220 = arith.constant 5.000000e-01 : f32
    %573 = vector.broadcast %cst_220 : f32 to vector<8x8xf32>
    %574 = arith.mulf %573, %572 : vector<8x8xf32>
    %575 = math.tanh %574 : vector<8x8xf32>
    %cst_221 = arith.constant 1.000000e+00 : f32
    %576 = vector.broadcast %cst_221 : f32 to vector<8x8xf32>
    %577 = arith.addf %575, %576 : vector<8x8xf32>
    %cst_222 = arith.constant 5.000000e-01 : f32
    %578 = vector.broadcast %cst_222 : f32 to vector<8x8xf32>
    %579 = arith.mulf %578, %577 : vector<8x8xf32>
    %580 = arith.mulf %565, %543 : vector<8x8xf32>
    %581 = arith.mulf %555, %569 : vector<8x8xf32>
    %582 = arith.addf %580, %581 : vector<8x8xf32>
    %583 = math.tanh %582 : vector<8x8xf32>
    %584 = arith.mulf %579, %583 : vector<8x8xf32>
    %585 = vector.extract_strided_slice %7 {offsets = [112, 0], sizes = [8, 8], strides = [1, 1]} : vector<128x8xf32> to vector<8x8xf32>
    %cst_223 = arith.constant dense<0.000000e+00> : vector<8x8xf32>
    %586 = tpu.matmul %584, %30, %cst_223 {dimension_numbers = #tpu.dot_dimension_numbers<[1], [0], [0], [1], [0, 0, 1, 1], [], []>} : vector<8x8xf32>, vector<8x8xf32>, vector<8x8xf32> -> vector<8x8xf32>
    %587 = arith.addf %585, %586 : vector<8x8xf32>
    %cst_224 = arith.constant 5.000000e-01 : f32
    %588 = vector.broadcast %cst_224 : f32 to vector<8x8xf32>
    %589 = arith.mulf %588, %587 : vector<8x8xf32>
    %590 = math.tanh %589 : vector<8x8xf32>
    %cst_225 = arith.constant 1.000000e+00 : f32
    %591 = vector.broadcast %cst_225 : f32 to vector<8x8xf32>
    %592 = arith.addf %590, %591 : vector<8x8xf32>
    %cst_226 = arith.constant 5.000000e-01 : f32
    %593 = vector.broadcast %cst_226 : f32 to vector<8x8xf32>
    %594 = arith.mulf %593, %592 : vector<8x8xf32>
    %595 = vector.extract_strided_slice %14 {offsets = [112, 0], sizes = [8, 8], strides = [1, 1]} : vector<128x8xf32> to vector<8x8xf32>
    %cst_227 = arith.constant dense<0.000000e+00> : vector<8x8xf32>
    %596 = tpu.matmul %584, %32, %cst_227 {dimension_numbers = #tpu.dot_dimension_numbers<[1], [0], [0], [1], [0, 0, 1, 1], [], []>} : vector<8x8xf32>, vector<8x8xf32>, vector<8x8xf32> -> vector<8x8xf32>
    %597 = arith.addf %595, %596 : vector<8x8xf32>
    %cst_228 = arith.constant 5.000000e-01 : f32
    %598 = vector.broadcast %cst_228 : f32 to vector<8x8xf32>
    %599 = arith.mulf %598, %597 : vector<8x8xf32>
    %600 = math.tanh %599 : vector<8x8xf32>
    %cst_229 = arith.constant 1.000000e+00 : f32
    %601 = vector.broadcast %cst_229 : f32 to vector<8x8xf32>
    %602 = arith.addf %600, %601 : vector<8x8xf32>
    %cst_230 = arith.constant 5.000000e-01 : f32
    %603 = vector.broadcast %cst_230 : f32 to vector<8x8xf32>
    %604 = arith.mulf %603, %602 : vector<8x8xf32>
    %605 = vector.extract_strided_slice %21 {offsets = [112, 0], sizes = [8, 8], strides = [1, 1]} : vector<128x8xf32> to vector<8x8xf32>
    %cst_231 = arith.constant dense<0.000000e+00> : vector<8x8xf32>
    %606 = tpu.matmul %584, %34, %cst_231 {dimension_numbers = #tpu.dot_dimension_numbers<[1], [0], [0], [1], [0, 0, 1, 1], [], []>} : vector<8x8xf32>, vector<8x8xf32>, vector<8x8xf32> -> vector<8x8xf32>
    %607 = arith.addf %605, %606 : vector<8x8xf32>
    %608 = math.tanh %607 : vector<8x8xf32>
    %609 = vector.extract_strided_slice %28 {offsets = [112, 0], sizes = [8, 8], strides = [1, 1]} : vector<128x8xf32> to vector<8x8xf32>
    %cst_232 = arith.constant dense<0.000000e+00> : vector<8x8xf32>
    %610 = tpu.matmul %584, %36, %cst_232 {dimension_numbers = #tpu.dot_dimension_numbers<[1], [0], [0], [1], [0, 0, 1, 1], [], []>} : vector<8x8xf32>, vector<8x8xf32>, vector<8x8xf32> -> vector<8x8xf32>
    %611 = arith.addf %609, %610 : vector<8x8xf32>
    %cst_233 = arith.constant 5.000000e-01 : f32
    %612 = vector.broadcast %cst_233 : f32 to vector<8x8xf32>
    %613 = arith.mulf %612, %611 : vector<8x8xf32>
    %614 = math.tanh %613 : vector<8x8xf32>
    %cst_234 = arith.constant 1.000000e+00 : f32
    %615 = vector.broadcast %cst_234 : f32 to vector<8x8xf32>
    %616 = arith.addf %614, %615 : vector<8x8xf32>
    %cst_235 = arith.constant 5.000000e-01 : f32
    %617 = vector.broadcast %cst_235 : f32 to vector<8x8xf32>
    %618 = arith.mulf %617, %616 : vector<8x8xf32>
    %619 = arith.mulf %604, %582 : vector<8x8xf32>
    %620 = arith.mulf %594, %608 : vector<8x8xf32>
    %621 = arith.addf %619, %620 : vector<8x8xf32>
    %622 = math.tanh %621 : vector<8x8xf32>
    %623 = arith.mulf %618, %622 : vector<8x8xf32>
    %624 = vector.extract_strided_slice %7 {offsets = [120, 0], sizes = [8, 8], strides = [1, 1]} : vector<128x8xf32> to vector<8x8xf32>
    %cst_236 = arith.constant dense<0.000000e+00> : vector<8x8xf32>
    %625 = tpu.matmul %623, %30, %cst_236 {dimension_numbers = #tpu.dot_dimension_numbers<[1], [0], [0], [1], [0, 0, 1, 1], [], []>} : vector<8x8xf32>, vector<8x8xf32>, vector<8x8xf32> -> vector<8x8xf32>
    %626 = arith.addf %624, %625 : vector<8x8xf32>
    %cst_237 = arith.constant 5.000000e-01 : f32
    %627 = vector.broadcast %cst_237 : f32 to vector<8x8xf32>
    %628 = arith.mulf %627, %626 : vector<8x8xf32>
    %629 = math.tanh %628 : vector<8x8xf32>
    %cst_238 = arith.constant 1.000000e+00 : f32
    %630 = vector.broadcast %cst_238 : f32 to vector<8x8xf32>
    %631 = arith.addf %629, %630 : vector<8x8xf32>
    %cst_239 = arith.constant 5.000000e-01 : f32
    %632 = vector.broadcast %cst_239 : f32 to vector<8x8xf32>
    %633 = arith.mulf %632, %631 : vector<8x8xf32>
    %634 = vector.extract_strided_slice %14 {offsets = [120, 0], sizes = [8, 8], strides = [1, 1]} : vector<128x8xf32> to vector<8x8xf32>
    %cst_240 = arith.constant dense<0.000000e+00> : vector<8x8xf32>
    %635 = tpu.matmul %623, %32, %cst_240 {dimension_numbers = #tpu.dot_dimension_numbers<[1], [0], [0], [1], [0, 0, 1, 1], [], []>} : vector<8x8xf32>, vector<8x8xf32>, vector<8x8xf32> -> vector<8x8xf32>
    %636 = arith.addf %634, %635 : vector<8x8xf32>
    %cst_241 = arith.constant 5.000000e-01 : f32
    %637 = vector.broadcast %cst_241 : f32 to vector<8x8xf32>
    %638 = arith.mulf %637, %636 : vector<8x8xf32>
    %639 = math.tanh %638 : vector<8x8xf32>
    %cst_242 = arith.constant 1.000000e+00 : f32
    %640 = vector.broadcast %cst_242 : f32 to vector<8x8xf32>
    %641 = arith.addf %639, %640 : vector<8x8xf32>
    %cst_243 = arith.constant 5.000000e-01 : f32
    %642 = vector.broadcast %cst_243 : f32 to vector<8x8xf32>
    %643 = arith.mulf %642, %641 : vector<8x8xf32>
    %644 = vector.extract_strided_slice %21 {offsets = [120, 0], sizes = [8, 8], strides = [1, 1]} : vector<128x8xf32> to vector<8x8xf32>
    %cst_244 = arith.constant dense<0.000000e+00> : vector<8x8xf32>
    %645 = tpu.matmul %623, %34, %cst_244 {dimension_numbers = #tpu.dot_dimension_numbers<[1], [0], [0], [1], [0, 0, 1, 1], [], []>} : vector<8x8xf32>, vector<8x8xf32>, vector<8x8xf32> -> vector<8x8xf32>
    %646 = arith.addf %644, %645 : vector<8x8xf32>
    %647 = math.tanh %646 : vector<8x8xf32>
    %648 = vector.extract_strided_slice %28 {offsets = [120, 0], sizes = [8, 8], strides = [1, 1]} : vector<128x8xf32> to vector<8x8xf32>
    %cst_245 = arith.constant dense<0.000000e+00> : vector<8x8xf32>
    %649 = tpu.matmul %623, %36, %cst_245 {dimension_numbers = #tpu.dot_dimension_numbers<[1], [0], [0], [1], [0, 0, 1, 1], [], []>} : vector<8x8xf32>, vector<8x8xf32>, vector<8x8xf32> -> vector<8x8xf32>
    %650 = arith.addf %648, %649 : vector<8x8xf32>
    %cst_246 = arith.constant 5.000000e-01 : f32
    %651 = vector.broadcast %cst_246 : f32 to vector<8x8xf32>
    %652 = arith.mulf %651, %650 : vector<8x8xf32>
    %653 = math.tanh %652 : vector<8x8xf32>
    %cst_247 = arith.constant 1.000000e+00 : f32
    %654 = vector.broadcast %cst_247 : f32 to vector<8x8xf32>
    %655 = arith.addf %653, %654 : vector<8x8xf32>
    %cst_248 = arith.constant 5.000000e-01 : f32
    %656 = vector.broadcast %cst_248 : f32 to vector<8x8xf32>
    %657 = arith.mulf %656, %655 : vector<8x8xf32>
    %658 = arith.mulf %643, %621 : vector<8x8xf32>
    %659 = arith.mulf %633, %647 : vector<8x8xf32>
    %660 = arith.addf %658, %659 : vector<8x8xf32>
    %661 = math.tanh %660 : vector<8x8xf32>
    %662 = arith.mulf %657, %661 : vector<8x8xf32>
    %cst_249 = arith.constant 0.000000e+00 : f32
    %663 = vector.broadcast %cst_249 : f32 to vector<8x8xf32>
    %664 = arith.maximumf %662, %663 : vector<8x8xf32>
    %c0_250 = arith.constant 0 : index
    %c0_251 = arith.constant 0 : index
    %665 = vector.load %arg6[%c0_250, %c0_251] : memref<8x32xf32, #tpu.memory_space<vmem>>, vector<8x32xf32>
    %cst_252 = arith.constant dense<0.000000e+00> : vector<8x32xf32>
    %666 = tpu.matmul %664, %665, %cst_252 {dimension_numbers = #tpu.dot_dimension_numbers<[1], [0], [0], [1], [0, 0, 1, 1], [], []>} : vector<8x8xf32>, vector<8x32xf32>, vector<8x32xf32> -> vector<8x32xf32>
    %c0_253 = arith.constant 0 : index
    %c0_254 = arith.constant 0 : index
    %667 = vector.load %arg7[%c0_253, %c0_254] : memref<1x32xf32, #tpu.memory_space<vmem>>, vector<1x32xf32>
    %668 = vector.broadcast %667 : vector<1x32xf32> to vector<8x32xf32>
    %669 = arith.addf %666, %668 : vector<8x32xf32>
    %cst_255 = arith.constant 0.000000e+00 : f32
    %670 = vector.broadcast %cst_255 : f32 to vector<8x32xf32>
    %671 = arith.maximumf %669, %670 : vector<8x32xf32>
    %c0_256 = arith.constant 0 : index
    %c0_257 = arith.constant 0 : index
    %672 = vector.load %arg8[%c0_256, %c0_257] : memref<32x2xf32, #tpu.memory_space<vmem>>, vector<32x2xf32>
    %cst_258 = arith.constant dense<0.000000e+00> : vector<8x2xf32>
    %673 = tpu.matmul %671, %672, %cst_258 {dimension_numbers = #tpu.dot_dimension_numbers<[1], [0], [0], [1], [0, 0, 1, 1], [], []>} : vector<8x32xf32>, vector<32x2xf32>, vector<8x2xf32> -> vector<8x2xf32>
    %c0_259 = arith.constant 0 : index
    %c0_260 = arith.constant 0 : index
    %674 = vector.load %arg9[%c0_259, %c0_260] : memref<1x2xf32, #tpu.memory_space<vmem>>, vector<1x2xf32>
    %675 = vector.broadcast %674 : vector<1x2xf32> to vector<8x2xf32>
    %676 = arith.addf %673, %675 : vector<8x2xf32>
    %cst_261 = arith.constant dense<0xFF800000> : vector<8xf32>
    %677 = vector.multi_reduction <maximumf>, %676, %cst_261 [1] : vector<8x2xf32> to vector<8xf32>
    %678 = vector.shape_cast %677 : vector<8xf32> to vector<8x1xf32>
    %679 = vector.broadcast %678 : vector<8x1xf32> to vector<8x2xf32>
    %680 = arith.subf %676, %679 : vector<8x2xf32>
    %681 = math.exp %680 : vector<8x2xf32>
    %cst_262 = arith.constant dense<0.000000e+00> : vector<8xf32>
    %682 = vector.multi_reduction <add>, %681, %cst_262 [1] : vector<8x2xf32> to vector<8xf32>
    %683 = vector.shape_cast %682 : vector<8xf32> to vector<8x1xf32>
    %684 = vector.broadcast %683 : vector<8x1xf32> to vector<8x2xf32>
    %685 = arith.divf %681, %684 : vector<8x2xf32>
    %c0_263 = arith.constant 0 : index
    %c0_264 = arith.constant 0 : index
    %686 = vector.load %arg10[%c0_263, %c0_264] : memref<8x2xf32, #tpu.memory_space<vmem>>, vector<8x2xf32>
    tpu.vector_store %arg10[%c0_263, %c0_264], %685 {strides = array<i32>} : memref<8x2xf32, #tpu.memory_space<vmem>>, vector<8x2xf32>,
    return
  }
}

</mosaic_0001>

<bundles_post_ra>
// kernel: pd_lstm_forward.1
= control target key start
LH: loop header
LB: loop body
LE: loop exit
PB: predicated region body
PF: predicated region fallthrough
CT: control target
= control target key end

     0   :  { %vm57_vm0 = vcmask 130048   ;;  %vm399_vm1 = vcmask 64512   ;;  %vm2118_vm2 = vcmask 261120   ;;  %vm2142_vm3 = vcmask 15360   ;;  %s3181_s3 = inlined_call_operand.vmem [shape: f32[4,16,8], index: 3, kind: input, shape index: {}]   ;;  %s3182_s0 = inlined_call_operand.vmem [shape: f32[128,16], index: 0, kind: input, shape index: {}]   ;;  %s3183_s4 = inlined_call_operand.vmem [shape: f32[4,8,8], index: 4, kind: input, shape index: {}]   ;;  %s3184_s5 = inlined_call_operand.vmem [shape: f32[4,1,8], index: 5, kind: input, shape index: {}]   ;;  %s3185_s1 = inlined_call_operand.vmem [shape: f32[8,8], index: 1, kind: input, shape index: {}]   ;;  %s3186_s2 = inlined_call_operand.vmem [shape: f32[8,8], index: 2, kind: input, shape index: {}]   ;;  %s3187_s7 = inlined_call_operand.vmem [shape: f32[1,32], index: 7, kind: input, shape index: {}]   ;;  %s3188_s6 = inlined_call_operand.vmem [shape: f32[8,32], index: 6, kind: input, shape index: {}]   ;;  %s3189_s8 = inlined_call_operand.vmem [shape: f32[32,2], index: 8, kind: input, shape index: {}]   ;;  %s3190_s9 = inlined_call_operand.vmem [shape: f32[1,2], index: 9, kind: input, shape index: {}]   ;;  %s3191_s10 = inlined_call_operand.vmem [shape: f32[8,2], index: 10, kind: output, shape index: {}]  }
   0x1   :  { %v52_v0 = vld [vmem:[%s3181_s3 + $0x8] sm:$0xff]  ;;  %v2189_v1 = vld [vmem:[%s3181_s3 + $0x18] sm:$0xff]  ;;  %v51_v4 = vld [vmem:[%s3181_s3] sm:$0xff] }
   0x2   :  { %v2208_v2 = vld [vmem:[%s3181_s3 + $0x28] sm:$0xff]  ;;  %120 = vmatpush.msra.mxu0 %v52_v0  ;;  %193 = vmatpush.msra.mxu1 %v2189_v1  ;;  %v2227_v3 = vld [vmem:[%s3181_s3 + $0x38] sm:$0xff]  ;;  %v2188_v5 = vld [vmem:[%s3181_s3 + $0x10] sm:$0xff] }
   0x3   :  { %266 = vmatpush.msra.mxu2 %v2208_v2  ;;  %339 = vmatpush.msra.mxu3 %v2227_v3  ;;  %v2207_v6 = vld [vmem:[%s3181_s3 + $0x20] sm:$0xff]  ;;  %v2226_v7 = vld [vmem:[%s3181_s3 + $0x30] sm:$0xff]  ;;  %v2582_v10 = vld [vmem:[%s3183_s4 + $0x8] sm:$0xff] }
   0x4   :  { %v35_v8 = vld [vmem:[%s3182_s0] sm:$0xff]  ;;  %121 = vmatpush.msra.mxu0 %v51_v4  ;;  %194 = vmatpush.msra.mxu1 %v2188_v5  ;;  %v2589_v11 = vld [vmem:[%s3183_s4 + $0x10] sm:$0xff]  ;;  %v2594_v12 = vld [vmem:[%s3183_s4 + $0x18] sm:$0xff] }
   0x5   :  { %267 = vmatpush.msra.mxu2 %v2207_v6  ;;  %340 = vmatpush.msra.mxu3 %v2226_v7  ;;  %v2577_v9 = vld [vmem:[%s3183_s4] sm:$0xff]  ;;  %v36_v13 = vld [vmem:[%s3182_s0 + $0x8] sm:$0xff]  ;;  %v37_v14 = vld [vmem:[%s3182_s0 + $0x10] sm:$0xff] }
   0x6   :  { %2172 = vmatmul.msk.f32.vlgmr.msra.gmra.mxu0 %vm57_vm0, %v35_v8  ;;  %2191 = vmatmul.msk.f32.vlgmr.msra.gmra.mxu1 %vm57_vm0, %v35_v8  ;;  %v38_v15 = vld [vmem:[%s3182_s0 + $0x18] sm:$0xff]  ;;  %v39_v16 = vld [vmem:[%s3182_s0 + $0x20] sm:$0xff]  ;;  %v40_v17 = vld [vmem:[%s3182_s0 + $0x28] sm:$0xff] }
   0x7   :  { %2210 = vmatmul.msk.f32.vlgmr.msra.gmra.mxu2 %vm57_vm0, %v35_v8  ;;  %2229 = vmatmul.msk.f32.vlgmr.msra.gmra.mxu3 %vm57_vm0, %v35_v8  ;;  %v41_v18 = vld [vmem:[%s3182_s0 + $0x30] sm:$0xff]  ;;  %v42_v19 = vld [vmem:[%s3182_s0 + $0x38] sm:$0xff]  ;;  %v43_v20 = vld [vmem:[%s3182_s0 + $0x40] sm:$0xff] }
   0x8   :  { %418 = vmatpush.msrb.mxu0 %v2577_v9  ;;  %443 = vmatpush.msrb.mxu1 %v2582_v10  ;;  %v44_v21 = vld [vmem:[%s3182_s0 + $0x48] sm:$0xff]  ;;  %v45_v22 = vld [vmem:[%s3182_s0 + $0x50] sm:$0xff]  ;;  %v46_v23 = vld [vmem:[%s3182_s0 + $0x58] sm:$0xff] }
   0x9   :  { %468 = vmatpush.msrb.mxu2 %v2589_v11  ;;  %490 = vmatpush.msrb.mxu3 %v2594_v12  ;;  %v47_v24 = vld [vmem:[%s3182_s0 + $0x60] sm:$0xff]  ;;  %v48_v25 = vld [vmem:[%s3182_s0 + $0x68] sm:$0xff]  ;;  %v49_v26 = vld [vmem:[%s3182_s0 + $0x70] sm:$0xff] }
   0xa   :  { %523 = vmatpush.msra.mxu0 %v2577_v9  ;;  %548 = vmatpush.msra.mxu1 %v2582_v10  ;;  %v50_v27 = vld [vmem:[%s3182_s0 + $0x78] sm:$0xff]  ;;  %v397_v30 = vld [vmem:[%s3185_s1] sm:$0xff] }
   0xb   :  { %573 = vmatpush.msra.mxu2 %v2589_v11  ;;  %595 = vmatpush.msra.mxu3 %v2594_v12 }
   0xe   :  { %2173 = vmatmul.msk.f32.gmra.mxu0 %vm57_vm0, %v36_v13  ;;  %2192 = vmatmul.msk.f32.gmra.mxu1 %vm57_vm0, %v36_v13 }
   0xf   :  { %2211 = vmatmul.msk.f32.gmra.mxu2 %vm57_vm0, %v36_v13  ;;  %2230 = vmatmul.msk.f32.gmra.mxu3 %vm57_vm0, %v36_v13 }
  0x16   :  { %2174 = vmatmul.msk.f32.gmra.mxu0 %vm57_vm0, %v37_v14  ;;  %2193 = vmatmul.msk.f32.gmra.mxu1 %vm57_vm0, %v37_v14 }
  0x17   :  { %2212 = vmatmul.msk.f32.gmra.mxu2 %vm57_vm0, %v37_v14  ;;  %2231 = vmatmul.msk.f32.gmra.mxu3 %vm57_vm0, %v37_v14 }
  0x1e   :  { %2175 = vmatmul.msk.f32.gmra.mxu0 %vm57_vm0, %v38_v15  ;;  %2194 = vmatmul.msk.f32.gmra.mxu1 %vm57_vm0, %v38_v15 }
  0x1f   :  { %2213 = vmatmul.msk.f32.gmra.mxu2 %vm57_vm0, %v38_v15  ;;  %2232 = vmatmul.msk.f32.gmra.mxu3 %vm57_vm0, %v38_v15 }
  0x26   :  { %2176 = vmatmul.msk.f32.gmra.mxu0 %vm57_vm0, %v39_v16  ;;  %2195 = vmatmul.msk.f32.gmra.mxu1 %vm57_vm0, %v39_v16 }
  0x27   :  { %2214 = vmatmul.msk.f32.gmra.mxu2 %vm57_vm0, %v39_v16  ;;  %2233 = vmatmul.msk.f32.gmra.mxu3 %vm57_vm0, %v39_v16 }
  0x2e   :  { %2177 = vmatmul.msk.f32.gmra.mxu0 %vm57_vm0, %v40_v17  ;;  %2196 = vmatmul.msk.f32.gmra.mxu1 %vm57_vm0, %v40_v17 }
  0x2f   :  { %2215 = vmatmul.msk.f32.gmra.mxu2 %vm57_vm0, %v40_v17  ;;  %2234 = vmatmul.msk.f32.gmra.mxu3 %vm57_vm0, %v40_v17 }
  0x36   :  { %2178 = vmatmul.msk.f32.gmra.mxu0 %vm57_vm0, %v41_v18  ;;  %2197 = vmatmul.msk.f32.gmra.mxu1 %vm57_vm0, %v41_v18 }
  0x37   :  { %2216 = vmatmul.msk.f32.gmra.mxu2 %vm57_vm0, %v41_v18  ;;  %2235 = vmatmul.msk.f32.gmra.mxu3 %vm57_vm0, %v41_v18 }
  0x3e   :  { %2179 = vmatmul.msk.f32.gmra.mxu0 %vm57_vm0, %v42_v19  ;;  %2198 = vmatmul.msk.f32.gmra.mxu1 %vm57_vm0, %v42_v19 }
  0x3f   :  { %2217 = vmatmul.msk.f32.gmra.mxu2 %vm57_vm0, %v42_v19  ;;  %2236 = vmatmul.msk.f32.gmra.mxu3 %vm57_vm0, %v42_v19 }
  0x46   :  { %2180 = vmatmul.msk.f32.gmra.mxu0 %vm57_vm0, %v43_v20  ;;  %2199 = vmatmul.msk.f32.gmra.mxu1 %vm57_vm0, %v43_v20 }
  0x47   :  { %2218 = vmatmul.msk.f32.gmra.mxu2 %vm57_vm0, %v43_v20  ;;  %2237 = vmatmul.msk.f32.gmra.mxu3 %vm57_vm0, %v43_v20 }
  0x4e   :  { %2181 = vmatmul.msk.f32.gmra.mxu0 %vm57_vm0, %v44_v21  ;;  %2200 = vmatmul.msk.f32.gmra.mxu1 %vm57_vm0, %v44_v21 }
  0x4f   :  { %2219 = vmatmul.msk.f32.gmra.mxu2 %vm57_vm0, %v44_v21  ;;  %2238 = vmatmul.msk.f32.gmra.mxu3 %vm57_vm0, %v44_v21 }
  0x56   :  { %2182 = vmatmul.msk.f32.gmra.mxu0 %vm57_vm0, %v45_v22  ;;  %2201 = vmatmul.msk.f32.gmra.mxu1 %vm57_vm0, %v45_v22 }
  0x57   :  { %2220 = vmatmul.msk.f32.gmra.mxu2 %vm57_vm0, %v45_v22  ;;  %2239 = vmatmul.msk.f32.gmra.mxu3 %vm57_vm0, %v45_v22 }
  0x5e   :  { %2183 = vmatmul.msk.f32.gmra.mxu0 %vm57_vm0, %v46_v23  ;;  %2202 = vmatmul.msk.f32.gmra.mxu1 %vm57_vm0, %v46_v23 }
  0x5f   :  { %2221 = vmatmul.msk.f32.gmra.mxu2 %vm57_vm0, %v46_v23  ;;  %2240 = vmatmul.msk.f32.gmra.mxu3 %vm57_vm0, %v46_v23 }
  0x66   :  { %2184 = vmatmul.msk.f32.gmra.mxu0 %vm57_vm0, %v47_v24  ;;  %2203 = vmatmul.msk.f32.gmra.mxu1 %vm57_vm0, %v47_v24 }
  0x67   :  { %2222 = vmatmul.msk.f32.gmra.mxu2 %vm57_vm0, %v47_v24  ;;  %2241 = vmatmul.msk.f32.gmra.mxu3 %vm57_vm0, %v47_v24 }
  0x6e   :  { %2185 = vmatmul.msk.f32.gmra.mxu0 %vm57_vm0, %v48_v25  ;;  %2204 = vmatmul.msk.f32.gmra.mxu1 %vm57_vm0, %v48_v25 }
  0x6f   :  { %2223 = vmatmul.msk.f32.gmra.mxu2 %vm57_vm0, %v48_v25  ;;  %2242 = vmatmul.msk.f32.gmra.mxu3 %vm57_vm0, %v48_v25 }
  0x76   :  { %2186 = vmatmul.msk.f32.gmra.mxu0 %vm57_vm0, %v49_v26  ;;  %2205 = vmatmul.msk.f32.gmra.mxu1 %vm57_vm0, %v49_v26 }
  0x77   :  { %2224 = vmatmul.msk.f32.gmra.mxu2 %vm57_vm0, %v49_v26  ;;  %2243 = vmatmul.msk.f32.gmra.mxu3 %vm57_vm0, %v49_v26 }
  0x7e   :  { %2187 = vmatmul.msk.f32.gmra.mxu0 %vm57_vm0, %v50_v27  ;;  %2206 = vmatmul.msk.f32.gmra.mxu1 %vm57_vm0, %v50_v27 }
  0x7f   :  { %2225 = vmatmul.msk.f32.gmra.mxu2 %vm57_vm0, %v50_v27  ;;  %2244 = vmatmul.msk.f32.gmra.mxu3 %vm57_vm0, %v50_v27 }
  0x83   :  { %v2711_v28 = vpop.f32.mrf.mxu0  ;;  %v2713_v29 = vpop.f32.mrf.mxu1 }
  0x86   :  { %2248 = vmatmul.msk.f32.vlgmr.msrb.gmra.mxu0 %vm399_vm1, %v397_v30  ;;  %2249 = vmatmul.msk.f32.vlgmr.msrb.gmra.mxu1 %vm399_vm1, %v397_v30 }
  0x87   :  { %2250 = vmatmul.msk.f32.vlgmr.msrb.gmra.mxu2 %vm399_vm1, %v397_v30  ;;  %2251 = vmatmul.msk.f32.vlgmr.msrb.gmra.mxu3 %vm399_vm1, %v397_v30 }
  0x88   :  { %628 = vmatpush.msrb.mxu0 %v2577_v9  ;;  %653 = vmatpush.msrb.mxu1 %v2582_v10 }
  0x89   :  { %678 = vmatpush.msrb.mxu2 %v2589_v11  ;;  %700 = vmatpush.msrb.mxu3 %v2594_v12 }
  0x8a   :  { %v2726_v31 = vpop.f32.mrf.mxu2  ;;  %v2728_v32 = vpop.f32.mrf.mxu3 }
  0x8b   :  { %v2730_v33 = vpop.f32.mrf.mxu0  ;;  %v2732_v34 = vpop.f32.mrf.mxu1 }
  0x92   :  { %v2734_v35 = vpop.f32.mrf.mxu2  ;;  %v2736_v36 = vpop.f32.mrf.mxu3 }
  0x93   :  { %v2738_v37 = vpop.f32.mrf.mxu0  ;;  %v2740_v38 = vpop.f32.mrf.mxu1 }
  0x9a   :  { %v2742_v39 = vpop.f32.mrf.mxu2  ;;  %v2744_v40 = vpop.f32.mrf.mxu3 }
  0x9b   :  { %v2746_v41 = vpop.f32.mrf.mxu0  ;;  %v2748_v42 = vpop.f32.mrf.mxu1 }
  0xa2   :  { %v2750_v43 = vpop.f32.mrf.mxu2  ;;  %v2752_v44 = vpop.f32.mrf.mxu3 }
  0xa3   :  { %v2754_v45 = vpop.f32.mrf.mxu0  ;;  %v2756_v46 = vpop.f32.mrf.mxu1 }
  0xaa   :  { %v2758_v47 = vpop.f32.mrf.mxu2  ;;  %v2760_v48 = vpop.f32.mrf.mxu3 }
  0xab   :  { %v2762_v49 = vpop.f32.mrf.mxu0  ;;  %v2764_v50 = vpop.f32.mrf.mxu1 }
  0xb2   :  { %v2766_v51 = vpop.f32.mrf.mxu2  ;;  %v2768_v52 = vpop.f32.mrf.mxu3 }
  0xb3   :  { %v2770_v53 = vpop.f32.mrf.mxu0  ;;  %v2772_v54 = vpop.f32.mrf.mxu1 }
  0xba   :  { %v2774_v55 = vpop.f32.mrf.mxu2  ;;  %v2776_v56 = vpop.f32.mrf.mxu3 }
  0xbb   :  { %v2778_v57 = vpop.f32.mrf.mxu0  ;;  %v2780_v58 = vpop.f32.mrf.mxu1 }
  0xc2   :  { %v2782_v59 = vpop.f32.mrf.mxu2  ;;  %v2784_v60 = vpop.f32.mrf.mxu3 }
  0xc3   :  { %v2786_v61 = vpop.f32.mrf.mxu0  ;;  %v2788_v62 = vpop.f32.mrf.mxu1 }
  0xca   :  { %v2790_v63 = vpop.f32.mrf.mxu2  ;;  %v2792_v0 = vpop.f32.mrf.mxu3 }
  0xcb   :  { %v2794_v1 = vpop.f32.mrf.mxu0  ;;  %v2796_v2 = vpop.f32.mrf.mxu1 }
  0xd2   :  { %v2798_v3 = vpop.f32.mrf.mxu2  ;;  %v2800_v4 = vpop.f32.mrf.mxu3 }
  0xd3   :  { %v2802_v5 = vpop.f32.mrf.mxu0  ;;  %v2804_v6 = vpop.f32.mrf.mxu1 }
  0xd4   :  { %3192 = vst [vmem:[#allocation2_spill] sm:$0xff] %v2804_v6 }
  0xda   :  { %v2806_v7 = vpop.f32.mrf.mxu2  ;;  %v2808_v8 = vpop.f32.mrf.mxu3 }
  0xdb   :  { %3193 = vst [vmem:[#allocation3_spill] sm:$0xff] %v2806_v7  ;;  %v2810_v13 = vpop.f32.mrf.mxu0  ;;  %v2812_v14 = vpop.f32.mrf.mxu1 }
  0xdc   :  { %3194 = vst [vmem:[#allocation4_spill] sm:$0xff] %v2808_v8 }
  0xdd   :  { %3195 = vst [vmem:[#allocation5_spill] sm:$0xff] %v2810_v13 }
  0xde   :  { %3196 = vst [vmem:[#allocation6_spill] sm:$0xff] %v2812_v14 }
  0xe2   :  { %v2814_v15 = vpop.f32.mrf.mxu2  ;;  %v2816_v16 = vpop.f32.mrf.mxu3 }
  0xe3   :  { %3197 = vst [vmem:[#allocation7_spill] sm:$0xff] %v2814_v15  ;;  %v2818_v17 = vpop.f32.mrf.mxu0  ;;  %v2820_v18 = vpop.f32.mrf.mxu1 }
  0xe4   :  { %3198 = vst [vmem:[#allocation8_spill] sm:$0xff] %v2816_v16 }
  0xe5   :  { %3199 = vst [vmem:[#allocation9_spill] sm:$0xff] %v2818_v17 }
  0xe6   :  { %3200 = vst [vmem:[#allocation10_spill] sm:$0xff] %v2820_v18 }
  0xea   :  { %v2822_v19 = vpop.f32.mrf.mxu2  ;;  %v2824_v20 = vpop.f32.mrf.mxu3 }
  0xeb   :  { %3201 = vst [vmem:[#allocation11_spill] sm:$0xff] %v2822_v19  ;;  %v2826_v21 = vpop.f32.mrf.mxu0  ;;  %v2828_v22 = vpop.f32.mrf.mxu1 }
  0xec   :  { %3202 = vst [vmem:[#allocation12_spill] sm:$0xff] %v2824_v20  ;;  %v2867_v20 = vld [vmem:[%s3184_s5 + $0x2] ss:$0 sm:$0xff] }
  0xed   :  { %3203 = vst [vmem:[#allocation13_spill] sm:$0xff] %v2826_v21 }
  0xee   :  { %3204 = vst [vmem:[#allocation14_spill] sm:$0xff] %v2828_v22  ;;  %v2849_v22 = vld [vmem:[%s3184_s5] ss:$0 sm:$0xff] }
  0xf2   :  { %v2830_v23 = vpop.f32.mrf.mxu2  ;;  %v2832_v24 = vpop.f32.mrf.mxu3 }
  0xf3   :  { %3205 = vst [vmem:[#allocation15_spill] sm:$0xff] %v2830_v23  ;;  %v2834_v25 = vpop.f32.mrf.mxu0  ;;  %v2836_v26 = vpop.f32.mrf.mxu1 }
  0xf4   :  { %3206 = vst [vmem:[#allocation16_spill] sm:$0xff] %v2832_v24  ;;  %v2854_v24 = vld [vmem:[%s3184_s5 + $0x1] ss:$0 sm:$0xff] }
  0xf5   :  { %3207 = vst [vmem:[#allocation17_spill] sm:$0xff] %v2834_v25 }
  0xf6   :  { %3208 = vst [vmem:[#allocation18_spill] sm:$0xff] %v2836_v26  ;;  %v124_v26 = vadd.f32 %v2849_v22, %v2711_v28  ;;  %v2872_v28 = vld [vmem:[%s3184_s5 + $0x3] ss:$0 sm:$0xff] }
  0xfa   :  { %v2838_v27 = vpop.f32.mrf.mxu2  ;;  %v2840_v30 = vpop.f32.mrf.mxu3 }
  0xfb   :  { %3209 = vst [vmem:[#allocation19_spill] sm:$0xff] %v2838_v27  ;;  %v2842_v18 = vpop.f32.mrf.mxu0  ;;  %v2844_v19 = vpop.f32.mrf.mxu1 }
  0xfc   :  { %3210 = vst [vmem:[#allocation20_spill] sm:$0xff] %v2840_v30  ;;  %v197_v30 = vadd.f32 %v2854_v24, %v2713_v29 }
  0xfd   :  { %3211 = vst [vmem:[#allocation21_spill] sm:$0xff] %v2842_v18 }
  0xfe   :  { %3212 = vst [vmem:[#allocation22_spill] sm:$0xff] %v2844_v19 }
 0x102   :  { %v2860_v27 = vpop.f32.mrf.mxu2  ;;  %v2862_v18 = vpop.f32.mrf.mxu3 }
 0x103   :  { %3213 = vst [vmem:[#allocation23_spill] sm:$0xff] %v2860_v27  ;;  %v420_v19 = vpop.f32.mrf.mxu0  ;;  %v445_v25 = vpop.f32.mrf.mxu1 }
 0x104   :  { %3214 = vst [vmem:[#allocation24_spill] sm:$0xff] %v2862_v18  ;;  %v423_v23 = vadd.f32 %v420_v19, %v124_v26  ;;  %v448_v21 = vadd.f32 %v445_v25, %v197_v30  ;;  %v270_v18 = vadd.f32 %v2867_v20, %v2726_v31  ;;  %v343_v19 = vadd.f32 %v2872_v28, %v2728_v32  ;;  %v398_v31 = vld [vmem:[%s3186_s2] sm:$0xff] }
 0x106   :  { %v424_v17 = vmul.f32 0.5, %v423_v23  ;;  %v449_v29 = vmul.f32 0.5, %v448_v21 }
 0x108   :  { %2320 = vtanh.f32 %v424_v17 }
 0x109   :  { %2322 = vtanh.f32 %v449_v29 }
 0x10a   :  { %v470_v25 = vpop.f32.mrf.mxu2  ;;  %v492_v26 = vpop.f32.mrf.mxu3 }
 0x10b   :  { %v473_v30 = vadd.f32 %v470_v25, %v270_v18  ;;  %v495_v27 = vadd.f32 %v492_v26, %v343_v19 }
 0x10d   :  { %2324 = vtanh.f32 %v473_v30  ;;  %v496_v16 = vmul.f32 0.5, %v495_v27 }
 0x10e   :  { %v2321_v15 = vpop.eup %2320 }
 0x10f   :  { %v2323_v14 = vpop.eup %2322  ;;  %v426_v13 = vadd.f32 1.0, %v2321_v15  ;;  %2326 = vtanh.f32 %v496_v16 }
 0x110   :  { %v451_v8 = vadd.f32 1.0, %v2323_v14 }
 0x111   :  { %v427_v21 = vmul.f32 0.5, %v426_v13 }
 0x112   :  { %v452_v17 = vmul.f32 0.5, %v451_v8  ;;  %v200_v8 = vadd.f32 %v2854_v24, %v2732_v34 }
 0x113   :  { %v2325_v23 = vpop.eup %2324 }
 0x114   :  { %v500_v32 = vmul.f32 %v452_v17, %v398_v31  ;;  %v501_v29 = vmul.f32 %v2325_v23, %v427_v21  ;;  %v273_v21 = vadd.f32 %v2867_v20, %v2734_v35  ;;  %v346_v31 = vadd.f32 %v2872_v28, %v2736_v36 }
 0x115   :  { %v2327_v7 = vpop.eup %2326 }
 0x116   :  { %v502_v6 = vadd.f32 %v501_v29, %v500_v32  ;;  %v498_v18 = vadd.f32 1.0, %v2327_v7  ;;  %v127_v7 = vadd.f32 %v2849_v22, %v2730_v33 }
 0x118   :  { %2328 = vtanh.f32 %v502_v6  ;;  %v499_v19 = vmul.f32 0.5, %v498_v18 }
 0x11e   :  { %v2329_v27 = vpop.eup %2328 }
 0x11f   :  { %v504_v25 = vmul.f32 %v2329_v27, %v499_v19 }
 0x121   :  { %2252 = vmatmul.msk.f32.vlgmr.msra.gmra.mxu0 %vm399_vm1, %v504_v25  ;;  %2253 = vmatmul.msk.f32.vlgmr.msra.gmra.mxu1 %vm399_vm1, %v504_v25 }
 0x122   :  { %2254 = vmatmul.msk.f32.vlgmr.msra.gmra.mxu2 %vm399_vm1, %v504_v25  ;;  %2255 = vmatmul.msk.f32.vlgmr.msra.gmra.mxu3 %vm399_vm1, %v504_v25 }
 0x123   :  { %733 = vmatpush.msra.mxu0 %v2577_v9  ;;  %758 = vmatpush.msra.mxu1 %v2582_v10 }
 0x124   :  { %783 = vmatpush.msra.mxu2 %v2589_v11  ;;  %805 = vmatpush.msra.mxu3 %v2594_v12 }
 0x19e   :  { %v525_v13 = vpop.f32.mrf.mxu0  ;;  %v550_v14 = vpop.f32.mrf.mxu1 }
 0x19f   :  { %v528_v15 = vadd.f32 %v525_v13, %v127_v7  ;;  %v553_v16 = vadd.f32 %v550_v14, %v200_v8 }
 0x1a1   :  { %v529_v26 = vmul.f32 0.5, %v528_v15  ;;  %v554_v30 = vmul.f32 0.5, %v553_v16 }
 0x1a3   :  { %2330 = vtanh.f32 %v529_v26 }
 0x1a4   :  { %2332 = vtanh.f32 %v554_v30 }
 0x1a5   :  { %v575_v17 = vpop.f32.mrf.mxu2  ;;  %v597_v23 = vpop.f32.mrf.mxu3 }
 0x1a6   :  { %v578_v33 = vadd.f32 %v575_v17, %v273_v21  ;;  %v600_v32 = vadd.f32 %v597_v23, %v346_v31  ;;  %v203_v21 = vadd.f32 %v2854_v24, %v2740_v38 }
 0x1a8   :  { %2334 = vtanh.f32 %v578_v33  ;;  %v601_v34 = vmul.f32 0.5, %v600_v32 }
 0x1a9   :  { %v2331_v29 = vpop.eup %2330 }
 0x1aa   :  { %v2333_v18 = vpop.eup %2332  ;;  %v531_v19 = vadd.f32 1.0, %v2331_v29  ;;  %2336 = vtanh.f32 %v601_v34  ;;  %v276_v29 = vadd.f32 %v2867_v20, %v2742_v39 }
 0x1ab   :  { %v556_v27 = vadd.f32 1.0, %v2333_v18  ;;  %v349_v18 = vadd.f32 %v2872_v28, %v2744_v40 }
 0x1ac   :  { %v532_v25 = vmul.f32 0.5, %v531_v19 }
 0x1ad   :  { %v557_v7 = vmul.f32 0.5, %v556_v27 }
 0x1ae   :  { %v2335_v8 = vpop.eup %2334 }
 0x1af   :  { %v605_v13 = vmul.f32 %v557_v7, %v502_v6  ;;  %v606_v35 = vmul.f32 %v2335_v8, %v532_v25  ;;  %v130_v6 = vadd.f32 %v2849_v22, %v2738_v37 }
 0x1b0   :  { %v2337_v14 = vpop.eup %2336 }
 0x1b1   :  { %v607_v15 = vadd.f32 %v606_v35, %v605_v13  ;;  %v603_v36 = vadd.f32 1.0, %v2337_v14 }
 0x1b3   :  { %2338 = vtanh.f32 %v607_v15  ;;  %v604_v16 = vmul.f32 0.5, %v603_v36 }
 0x1b9   :  { %v2339_v26 = vpop.eup %2338 }
 0x1ba   :  { %v609_v30 = vmul.f32 %v2339_v26, %v604_v16 }
 0x1bc   :  { %2256 = vmatmul.msk.f32.vlgmr.msrb.gmra.mxu0 %vm399_vm1, %v609_v30  ;;  %2257 = vmatmul.msk.f32.vlgmr.msrb.gmra.mxu1 %vm399_vm1, %v609_v30 }
 0x1bd   :  { %2258 = vmatmul.msk.f32.vlgmr.msrb.gmra.mxu2 %vm399_vm1, %v609_v30  ;;  %2259 = vmatmul.msk.f32.vlgmr.msrb.gmra.mxu3 %vm399_vm1, %v609_v30 }
 0x1be   :  { %838 = vmatpush.msrb.mxu0 %v2577_v9  ;;  %863 = vmatpush.msrb.mxu1 %v2582_v10 }
 0x1bf   :  { %888 = vmatpush.msrb.mxu2 %v2589_v11  ;;  %910 = vmatpush.msrb.mxu3 %v2594_v12 }
 0x239   :  { %v630_v31 = vpop.f32.mrf.mxu0  ;;  %v655_v17 = vpop.f32.mrf.mxu1 }
 0x23a   :  { %v633_v23 = vadd.f32 %v630_v31, %v130_v6  ;;  %v658_v33 = vadd.f32 %v655_v17, %v203_v21 }
 0x23c   :  { %v634_v32 = vmul.f32 0.5, %v633_v23  ;;  %v659_v34 = vmul.f32 0.5, %v658_v33  ;;  %v206_v23 = vadd.f32 %v2854_v24, %v2748_v42 }
 0x23e   :  { %2340 = vtanh.f32 %v634_v32 }
 0x23f   :  { %2342 = vtanh.f32 %v659_v34 }
 0x240   :  { %v680_v19 = vpop.f32.mrf.mxu2  ;;  %v702_v27 = vpop.f32.mrf.mxu3 }
 0x241   :  { %v683_v37 = vadd.f32 %v680_v19, %v276_v29  ;;  %v705_v25 = vadd.f32 %v702_v27, %v349_v18  ;;  %v279_v27 = vadd.f32 %v2867_v20, %v2750_v43 }
 0x243   :  { %2344 = vtanh.f32 %v683_v37  ;;  %v706_v38 = vmul.f32 0.5, %v705_v25  ;;  %v352_v37 = vadd.f32 %v2872_v28, %v2752_v44 }
 0x244   :  { %v2341_v7 = vpop.eup %2340 }
 0x245   :  { %v2343_v8 = vpop.eup %2342  ;;  %v636_v13 = vadd.f32 1.0, %v2341_v7  ;;  %2346 = vtanh.f32 %v706_v38 }
 0x246   :  { %v661_v35 = vadd.f32 1.0, %v2343_v8 }
 0x247   :  { %v637_v14 = vmul.f32 0.5, %v636_v13 }
 0x248   :  { %v662_v36 = vmul.f32 0.5, %v661_v35 }
 0x249   :  { %v2345_v16 = vpop.eup %2344 }
 0x24a   :  { %v710_v26 = vmul.f32 %v662_v36, %v607_v15  ;;  %v711_v39 = vmul.f32 %v2345_v16, %v637_v14  ;;  %v133_v15 = vadd.f32 %v2849_v22, %v2746_v41 }
 0x24b   :  { %v2347_v30 = vpop.eup %2346 }
 0x24c   :  { %v712_v6 = vadd.f32 %v711_v39, %v710_v26  ;;  %v708_v40 = vadd.f32 1.0, %v2347_v30 }
 0x24e   :  { %2348 = vtanh.f32 %v712_v6  ;;  %v709_v21 = vmul.f32 0.5, %v708_v40 }
 0x254   :  { %v2349_v31 = vpop.eup %2348 }
 0x255   :  { %v714_v17 = vmul.f32 %v2349_v31, %v709_v21 }
 0x257   :  { %2260 = vmatmul.msk.f32.vlgmr.msra.gmra.mxu0 %vm399_vm1, %v714_v17  ;;  %2261 = vmatmul.msk.f32.vlgmr.msra.gmra.mxu1 %vm399_vm1, %v714_v17 }
 0x258   :  { %2262 = vmatmul.msk.f32.vlgmr.msra.gmra.mxu2 %vm399_vm1, %v714_v17  ;;  %2263 = vmatmul.msk.f32.vlgmr.msra.gmra.mxu3 %vm399_vm1, %v714_v17 }
 0x259   :  { %943 = vmatpush.msra.mxu0 %v2577_v9  ;;  %968 = vmatpush.msra.mxu1 %v2582_v10 }
 0x25a   :  { %993 = vmatpush.msra.mxu2 %v2589_v11  ;;  %1015 = vmatpush.msra.mxu3 %v2594_v12 }
 0x2d4   :  { %v735_v33 = vpop.f32.mrf.mxu0  ;;  %v760_v32 = vpop.f32.mrf.mxu1 }
 0x2d5   :  { %v738_v34 = vadd.f32 %v735_v33, %v133_v15  ;;  %v763_v29 = vadd.f32 %v760_v32, %v206_v23  ;;  %v209_v15 = vadd.f32 %v2854_v24, %v2756_v46 }
 0x2d7   :  { %v739_v18 = vmul.f32 0.5, %v738_v34  ;;  %v764_v19 = vmul.f32 0.5, %v763_v29 }
 0x2d9   :  { %2350 = vtanh.f32 %v739_v18 }
 0x2da   :  { %2352 = vtanh.f32 %v764_v19  ;;  %v282_v19 = vadd.f32 %v2867_v20, %v2758_v47 }
 0x2db   :  { %v785_v25 = vpop.f32.mrf.mxu2  ;;  %v807_v38 = vpop.f32.mrf.mxu3 }
 0x2dc   :  { %v788_v41 = vadd.f32 %v785_v25, %v279_v27  ;;  %v810_v7 = vadd.f32 %v807_v38, %v352_v37  ;;  %v355_v27 = vadd.f32 %v2872_v28, %v2760_v48 }
 0x2de   :  { %2354 = vtanh.f32 %v788_v41  ;;  %v811_v42 = vmul.f32 0.5, %v810_v7 }
 0x2df   :  { %v2351_v8 = vpop.eup %2350 }
 0x2e0   :  { %v2353_v13 = vpop.eup %2352  ;;  %v741_v35 = vadd.f32 1.0, %v2351_v8  ;;  %2356 = vtanh.f32 %v811_v42 }
 0x2e1   :  { %v766_v14 = vadd.f32 1.0, %v2353_v13 }
 0x2e2   :  { %v742_v36 = vmul.f32 0.5, %v741_v35 }
 0x2e3   :  { %v767_v16 = vmul.f32 0.5, %v766_v14 }
 0x2e4   :  { %v2355_v26 = vpop.eup %2354 }
 0x2e5   :  { %v815_v39 = vmul.f32 %v767_v16, %v712_v6  ;;  %v816_v43 = vmul.f32 %v2355_v26, %v742_v36  ;;  %v136_v6 = vadd.f32 %v2849_v22, %v2754_v45 }
 0x2e6   :  { %v2357_v30 = vpop.eup %2356 }
 0x2e7   :  { %v817_v40 = vadd.f32 %v816_v43, %v815_v39  ;;  %v813_v44 = vadd.f32 1.0, %v2357_v30 }
 0x2e9   :  { %2358 = vtanh.f32 %v817_v40  ;;  %v814_v21 = vmul.f32 0.5, %v813_v44  ;;  %v212_v44 = vadd.f32 %v2854_v24, %v2764_v50 }
 0x2ef   :  { %v2359_v31 = vpop.eup %2358 }
 0x2f0   :  { %v819_v17 = vmul.f32 %v2359_v31, %v814_v21 }
 0x2f2   :  { %2264 = vmatmul.msk.f32.vlgmr.msrb.gmra.mxu0 %vm399_vm1, %v819_v17  ;;  %2265 = vmatmul.msk.f32.vlgmr.msrb.gmra.mxu1 %vm399_vm1, %v819_v17 }
 0x2f3   :  { %2266 = vmatmul.msk.f32.vlgmr.msrb.gmra.mxu2 %vm399_vm1, %v819_v17  ;;  %2267 = vmatmul.msk.f32.vlgmr.msrb.gmra.mxu3 %vm399_vm1, %v819_v17 }
 0x2f4   :  { %1048 = vmatpush.msrb.mxu0 %v2577_v9  ;;  %1073 = vmatpush.msrb.mxu1 %v2582_v10 }
 0x2f5   :  { %1098 = vmatpush.msrb.mxu2 %v2589_v11  ;;  %1120 = vmatpush.msrb.mxu3 %v2594_v12 }
 0x36f   :  { %v840_v23 = vpop.f32.mrf.mxu0  ;;  %v865_v33 = vpop.f32.mrf.mxu1 }
 0x370   :  { %v843_v32 = vadd.f32 %v840_v23, %v136_v6  ;;  %v868_v34 = vadd.f32 %v865_v33, %v209_v15  ;;  %v285_v33 = vadd.f32 %v2867_v20, %v2766_v51 }
 0x372   :  { %v844_v29 = vmul.f32 0.5, %v843_v32  ;;  %v869_v18 = vmul.f32 0.5, %v868_v34  ;;  %v358_v32 = vadd.f32 %v2872_v28, %v2768_v52 }
 0x374   :  { %2360 = vtanh.f32 %v844_v29 }
 0x375   :  { %2362 = vtanh.f32 %v869_v18 }
 0x376   :  { %v890_v37 = vpop.f32.mrf.mxu2  ;;  %v912_v25 = vpop.f32.mrf.mxu3 }
 0x377   :  { %v893_v45 = vadd.f32 %v890_v37, %v282_v19  ;;  %v915_v38 = vadd.f32 %v912_v25, %v355_v27 }
 0x379   :  { %2364 = vtanh.f32 %v893_v45  ;;  %v916_v46 = vmul.f32 0.5, %v915_v38 }
 0x37a   :  { %v2361_v41 = vpop.eup %2360 }
 0x37b   :  { %v2363_v7 = vpop.eup %2362  ;;  %v846_v42 = vadd.f32 1.0, %v2361_v41  ;;  %2366 = vtanh.f32 %v916_v46 }
 0x37c   :  { %v871_v8 = vadd.f32 1.0, %v2363_v7 }
 0x37d   :  { %v847_v13 = vmul.f32 0.5, %v846_v42 }
 0x37e   :  { %v872_v35 = vmul.f32 0.5, %v871_v8 }
 0x37f   :  { %v2365_v14 = vpop.eup %2364 }
 0x380   :  { %v920_v36 = vmul.f32 %v872_v35, %v817_v40  ;;  %v921_v47 = vmul.f32 %v2365_v14, %v847_v13  ;;  %v139_v40 = vadd.f32 %v2849_v22, %v2762_v49  ;;  %v142_v14 = vadd.f32 %v2849_v22, %v2770_v53 }
 0x381   :  { %v2367_v16 = vpop.eup %2366 }
 0x382   :  { %v922_v26 = vadd.f32 %v921_v47, %v920_v36  ;;  %v918_v48 = vadd.f32 1.0, %v2367_v16  ;;  %v215_v36 = vadd.f32 %v2854_v24, %v2772_v54 }
 0x384   :  { %2368 = vtanh.f32 %v922_v26  ;;  %v919_v39 = vmul.f32 0.5, %v918_v48 }
 0x38a   :  { %v2369_v43 = vpop.eup %2368 }
 0x38b   :  { %v924_v30 = vmul.f32 %v2369_v43, %v919_v39 }
 0x38d   :  { %2268 = vmatmul.msk.f32.vlgmr.msra.gmra.mxu0 %vm399_vm1, %v924_v30  ;;  %2269 = vmatmul.msk.f32.vlgmr.msra.gmra.mxu1 %vm399_vm1, %v924_v30 }
 0x38e   :  { %2270 = vmatmul.msk.f32.vlgmr.msra.gmra.mxu2 %vm399_vm1, %v924_v30  ;;  %2271 = vmatmul.msk.f32.vlgmr.msra.gmra.mxu3 %vm399_vm1, %v924_v30  ;;  %v288_v30 = vadd.f32 %v2867_v20, %v2774_v55 }
 0x38f   :  { %1153 = vmatpush.msra.mxu0 %v2577_v9  ;;  %1178 = vmatpush.msra.mxu1 %v2582_v10 }
 0x390   :  { %1203 = vmatpush.msra.mxu2 %v2589_v11  ;;  %1225 = vmatpush.msra.mxu3 %v2594_v12 }
 0x40a   :  { %v945_v21 = vpop.f32.mrf.mxu0  ;;  %v970_v31 = vpop.f32.mrf.mxu1 }
 0x40b   :  { %v948_v17 = vadd.f32 %v945_v21, %v139_v40  ;;  %v973_v6 = vadd.f32 %v970_v31, %v212_v44  ;;  %v361_v40 = vadd.f32 %v2872_v28, %v2776_v56 }
 0x40d   :  { %v949_v15 = vmul.f32 0.5, %v948_v17  ;;  %v974_v23 = vmul.f32 0.5, %v973_v6 }
 0x40f   :  { %2370 = vtanh.f32 %v949_v15 }
 0x410   :  { %2372 = vtanh.f32 %v974_v23 }
 0x411   :  { %v995_v34 = vpop.f32.mrf.mxu2  ;;  %v1017_v29 = vpop.f32.mrf.mxu3 }
 0x412   :  { %v998_v49 = vadd.f32 %v995_v34, %v285_v33  ;;  %v1020_v18 = vadd.f32 %v1017_v29, %v358_v32 }
 0x414   :  { %2374 = vtanh.f32 %v998_v49  ;;  %v1021_v50 = vmul.f32 0.5, %v1020_v18 }
 0x415   :  { %v2371_v19 = vpop.eup %2370 }
 0x416   :  { %v2373_v27 = vpop.eup %2372  ;;  %v951_v37 = vadd.f32 1.0, %v2371_v19  ;;  %2376 = vtanh.f32 %v1021_v50 }
 0x417   :  { %v976_v25 = vadd.f32 1.0, %v2373_v27 }
 0x418   :  { %v952_v45 = vmul.f32 0.5, %v951_v37  ;;  %v145_v37 = vadd.f32 %v2849_v22, %v2778_v57 }
 0x419   :  { %v977_v38 = vmul.f32 0.5, %v976_v25  ;;  %v218_v25 = vadd.f32 %v2854_v24, %v2780_v58 }
 0x41a   :  { %v2375_v46 = vpop.eup %2374 }
 0x41b   :  { %v1025_v41 = vmul.f32 %v977_v38, %v922_v26  ;;  %v1026_v51 = vmul.f32 %v2375_v46, %v952_v45 }
 0x41c   :  { %v2377_v7 = vpop.eup %2376 }
 0x41d   :  { %v1027_v42 = vadd.f32 %v1026_v51, %v1025_v41  ;;  %v1023_v52 = vadd.f32 1.0, %v2377_v7 }
 0x41f   :  { %2378 = vtanh.f32 %v1027_v42  ;;  %v1024_v8 = vmul.f32 0.5, %v1023_v52 }
 0x425   :  { %v2379_v13 = vpop.eup %2378 }
 0x426   :  { %v1029_v35 = vmul.f32 %v2379_v13, %v1024_v8 }
 0x428   :  { %2272 = vmatmul.msk.f32.vlgmr.msrb.gmra.mxu0 %vm399_vm1, %v1029_v35  ;;  %2273 = vmatmul.msk.f32.vlgmr.msrb.gmra.mxu1 %vm399_vm1, %v1029_v35 }
 0x429   :  { %2274 = vmatmul.msk.f32.vlgmr.msrb.gmra.mxu2 %vm399_vm1, %v1029_v35  ;;  %2275 = vmatmul.msk.f32.vlgmr.msrb.gmra.mxu3 %vm399_vm1, %v1029_v35 }
 0x42a   :  { %1258 = vmatpush.msrb.mxu0 %v2577_v9  ;;  %1283 = vmatpush.msrb.mxu1 %v2582_v10 }
 0x42b   :  { %1308 = vmatpush.msrb.mxu2 %v2589_v11  ;;  %1330 = vmatpush.msrb.mxu3 %v2594_v12 }
 0x4a5   :  { %v1050_v47 = vpop.f32.mrf.mxu0  ;;  %v1075_v16 = vpop.f32.mrf.mxu1 }
 0x4a6   :  { %v1053_v26 = vadd.f32 %v1050_v47, %v142_v14  ;;  %v1078_v48 = vadd.f32 %v1075_v16, %v215_v36 }
 0x4a8   :  { %v1054_v39 = vmul.f32 0.5, %v1053_v26  ;;  %v1079_v43 = vmul.f32 0.5, %v1078_v48 }
 0x4aa   :  { %2380 = vtanh.f32 %v1054_v39 }
 0x4ab   :  { %2382 = vtanh.f32 %v1079_v43 }
 0x4ac   :  { %v1100_v44 = vpop.f32.mrf.mxu2  ;;  %v1122_v21 = vpop.f32.mrf.mxu3 }
 0x4ad   :  { %v1103_v53 = vadd.f32 %v1100_v44, %v288_v30  ;;  %v1125_v31 = vadd.f32 %v1122_v21, %v361_v40  ;;  %v3000_v40 = vld [vmem:[%s3183_s4] sm:$0xff]  ;;  %v3006_v44 = vld [vmem:[%s3183_s4 + $0x8] sm:$0xff]  ;;  %v3012_v21 = vld [vmem:[%s3183_s4 + $0x10] sm:$0xff] }
 0x4af   :  { %2384 = vtanh.f32 %v1103_v53  ;;  %v1126_v54 = vmul.f32 0.5, %v1125_v31  ;;  %v3018_v53 = vld [vmem:[%s3183_s4 + $0x18] sm:$0xff]  ;;  %v148_v31 = vadd.f32 %v2849_v22, %v2786_v61 }
 0x4b0   :  { %v2381_v17 = vpop.eup %2380 }
 0x4b1   :  { %v2383_v6 = vpop.eup %2382  ;;  %v1056_v15 = vadd.f32 1.0, %v2381_v17  ;;  %2386 = vtanh.f32 %v1126_v54  ;;  %v221_v54 = vadd.f32 %v2854_v24, %v2788_v62 }
 0x4b2   :  { %v1081_v23 = vadd.f32 1.0, %v2383_v6 }
 0x4b3   :  { %v1057_v33 = vmul.f32 0.5, %v1056_v15 }
 0x4b4   :  { %v1082_v32 = vmul.f32 0.5, %v1081_v23 }
 0x4b5   :  { %v2385_v34 = vpop.eup %2384 }
 0x4b6   :  { %v1130_v29 = vmul.f32 %v1082_v32, %v1027_v42  ;;  %v1131_v55 = vmul.f32 %v2385_v34, %v1057_v33  ;;  %v294_v34 = vadd.f32 %v2867_v20, %v2790_v63 }
 0x4b7   :  { %v2387_v49 = vpop.eup %2386 }
 0x4b8   :  { %v1132_v18 = vadd.f32 %v1131_v55, %v1130_v29  ;;  %v1128_v56 = vadd.f32 1.0, %v2387_v49  ;;  %v367_v29 = vadd.f32 %v2872_v28, %v2792_v0 }
 0x4ba   :  { %2388 = vtanh.f32 %v1132_v18  ;;  %v1129_v50 = vmul.f32 0.5, %v1128_v56 }
 0x4c0   :  { %v2389_v19 = vpop.eup %2388 }
 0x4c1   :  { %v1134_v27 = vmul.f32 %v2389_v19, %v1129_v50 }
 0x4c3   :  { %2276 = vmatmul.msk.f32.vlgmr.msra.gmra.mxu0 %vm399_vm1, %v1134_v27  ;;  %2277 = vmatmul.msk.f32.vlgmr.msra.gmra.mxu1 %vm399_vm1, %v1134_v27 }
 0x4c4   :  { %2278 = vmatmul.msk.f32.vlgmr.msra.gmra.mxu2 %vm399_vm1, %v1134_v27  ;;  %2279 = vmatmul.msk.f32.vlgmr.msra.gmra.mxu3 %vm399_vm1, %v1134_v27 }
 0x4c5   :  { %1363 = vmatpush.msra.mxu0 %v2577_v9  ;;  %1388 = vmatpush.msra.mxu1 %v2582_v10  ;;  %v291_v9 = vadd.f32 %v2867_v20, %v2782_v59  ;;  %v364_v10 = vadd.f32 %v2872_v28, %v2784_v60 }
 0x4c6   :  { %1413 = vmatpush.msra.mxu2 %v2589_v11  ;;  %1435 = vmatpush.msra.mxu3 %v2594_v12 }
 0x540   :  { %v1155_v45 = vpop.f32.mrf.mxu0  ;;  %v1180_v38 = vpop.f32.mrf.mxu1 }
 0x541   :  { %v1158_v46 = vadd.f32 %v1155_v45, %v145_v37  ;;  %v1183_v41 = vadd.f32 %v1180_v38, %v218_v25 }
 0x543   :  { %v1159_v51 = vmul.f32 0.5, %v1158_v46  ;;  %v1184_v7 = vmul.f32 0.5, %v1183_v41 }
 0x545   :  { %2390 = vtanh.f32 %v1159_v51 }
 0x546   :  { %2392 = vtanh.f32 %v1184_v7 }
 0x547   :  { %v1205_v11 = vpop.f32.mrf.mxu2  ;;  %v1227_v12 = vpop.f32.mrf.mxu3 }
 0x548   :  { %v1208_v57 = vadd.f32 %v1205_v11, %v291_v9  ;;  %v1230_v42 = vadd.f32 %v1227_v12, %v364_v10  ;;  %v151_v10 = vadd.f32 %v2849_v22, %v2794_v1  ;;  %v224_v11 = vadd.f32 %v2854_v24, %v2796_v2 }
 0x54a   :  { %2394 = vtanh.f32 %v1208_v57  ;;  %v1231_v58 = vmul.f32 0.5, %v1230_v42 }
 0x54b   :  { %v2391_v52 = vpop.eup %2390 }
 0x54c   :  { %v2393_v8 = vpop.eup %2392  ;;  %v1161_v13 = vadd.f32 1.0, %v2391_v52  ;;  %2396 = vtanh.f32 %v1231_v58 }
 0x54d   :  { %v1186_v35 = vadd.f32 1.0, %v2393_v8 }
 0x54e   :  { %v1162_v14 = vmul.f32 0.5, %v1161_v13  ;;  %v297_v13 = vadd.f32 %v2867_v20, %v2798_v3 }
 0x54f   :  { %v1187_v36 = vmul.f32 0.5, %v1186_v35  ;;  %v370_v35 = vadd.f32 %v2872_v28, %v2800_v4 }
 0x550   :  { %v2395_v47 = vpop.eup %2394 }
 0x551   :  { %v1235_v16 = vmul.f32 %v1187_v36, %v1132_v18  ;;  %v1236_v59 = vmul.f32 %v2395_v47, %v1162_v14 }
 0x552   :  { %v2397_v26 = vpop.eup %2396 }
 0x553   :  { %v1237_v48 = vadd.f32 %v1236_v59, %v1235_v16  ;;  %v1233_v60 = vadd.f32 1.0, %v2397_v26 }
 0x555   :  { %2398 = vtanh.f32 %v1237_v48  ;;  %v1234_v39 = vmul.f32 0.5, %v1233_v60 }
 0x55b   :  { %v2399_v43 = vpop.eup %2398 }
 0x55c   :  { %v1239_v30 = vmul.f32 %v2399_v43, %v1234_v39 }
 0x55e   :  { %2280 = vmatmul.msk.f32.vlgmr.msrb.gmra.mxu0 %vm399_vm1, %v1239_v30  ;;  %2281 = vmatmul.msk.f32.vlgmr.msrb.gmra.mxu1 %vm399_vm1, %v1239_v30 }
 0x55f   :  { %2282 = vmatmul.msk.f32.vlgmr.msrb.gmra.mxu2 %vm399_vm1, %v1239_v30  ;;  %2283 = vmatmul.msk.f32.vlgmr.msrb.gmra.mxu3 %vm399_vm1, %v1239_v30 }
 0x560   :  { %1468 = vmatpush.msrb.mxu0 %v3000_v40  ;;  %1493 = vmatpush.msrb.mxu1 %v3006_v44 }
 0x561   :  { %1518 = vmatpush.msrb.mxu2 %v3012_v21  ;;  %1540 = vmatpush.msrb.mxu3 %v3018_v53 }
 0x5db   :  { %v1260_v17 = vpop.f32.mrf.mxu0  ;;  %v1285_v6 = vpop.f32.mrf.mxu1 }
 0x5dc   :  { %v1263_v15 = vadd.f32 %v1260_v17, %v148_v31  ;;  %v1288_v23 = vadd.f32 %v1285_v6, %v221_v54 }
 0x5de   :  { %v1264_v33 = vmul.f32 0.5, %v1263_v15  ;;  %v1289_v32 = vmul.f32 0.5, %v1288_v23  ;;  %v154_v23 = vadd.f32 %v2849_v22, %v2802_v5 }
 0x5e0   :  { %2400 = vtanh.f32 %v1264_v33  ;;  %v3215_v33 = vld [vmem:[#allocation2_spill] sm:$0xff] }
 0x5e1   :  { %2402 = vtanh.f32 %v1289_v32  ;;  %v227_v32 = vadd.f32 %v2854_v24, %v3215_v33 }
 0x5e2   :  { %v1310_v55 = vpop.f32.mrf.mxu2  ;;  %v1332_v49 = vpop.f32.mrf.mxu3 }
 0x5e3   :  { %v1313_v61 = vadd.f32 %v1310_v55, %v294_v34  ;;  %v1335_v18 = vadd.f32 %v1332_v49, %v367_v29 }
 0x5e5   :  { %2404 = vtanh.f32 %v1313_v61  ;;  %v1336_v62 = vmul.f32 0.5, %v1335_v18 }
 0x5e6   :  { %v2401_v56 = vpop.eup %2400 }
 0x5e7   :  { %v2403_v50 = vpop.eup %2402  ;;  %v1266_v19 = vadd.f32 1.0, %v2401_v56  ;;  %2406 = vtanh.f32 %v1336_v62  ;;  %v3216_v62 = vld [vmem:[#allocation3_spill] sm:$0xff] }
 0x5e8   :  { %v1291_v27 = vadd.f32 1.0, %v2403_v50  ;;  %v300_v56 = vadd.f32 %v2867_v20, %v3216_v62  ;;  %v3217_v50 = vld [vmem:[#allocation4_spill] sm:$0xff] }
 0x5e9   :  { %v1267_v37 = vmul.f32 0.5, %v1266_v19  ;;  %v373_v19 = vadd.f32 %v2872_v28, %v3217_v50  ;;  %v3223_v50 = vld [vmem:[#allocation10_spill] sm:$0xff] }
 0x5ea   :  { %v1292_v25 = vmul.f32 0.5, %v1291_v27 }
 0x5eb   :  { %v2405_v45 = vpop.eup %2404 }
 0x5ec   :  { %v1340_v38 = vmul.f32 %v1292_v25, %v1237_v48  ;;  %v1341_v63 = vmul.f32 %v2405_v45, %v1267_v37 }
 0x5ed   :  { %v2407_v46 = vpop.eup %2406 }
 0x5ee   :  { %v1342_v41 = vadd.f32 %v1341_v63, %v1340_v38  ;;  %v1338_v0 = vadd.f32 1.0, %v2407_v46 }
 0x5f0   :  { %2408 = vtanh.f32 %v1342_v41  ;;  %v1339_v51 = vmul.f32 0.5, %v1338_v0 }
 0x5f6   :  { %v2409_v7 = vpop.eup %2408 }
 0x5f7   :  { %v1344_v9 = vmul.f32 %v2409_v7, %v1339_v51 }
 0x5f9   :  { %2284 = vmatmul.msk.f32.vlgmr.msra.gmra.mxu0 %vm399_vm1, %v1344_v9  ;;  %2285 = vmatmul.msk.f32.vlgmr.msra.gmra.mxu1 %vm399_vm1, %v1344_v9 }
 0x5fa   :  { %2286 = vmatmul.msk.f32.vlgmr.msra.gmra.mxu2 %vm399_vm1, %v1344_v9  ;;  %2287 = vmatmul.msk.f32.vlgmr.msra.gmra.mxu3 %vm399_vm1, %v1344_v9 }
 0x5fb   :  { %1573 = vmatpush.msra.mxu0 %v3000_v40  ;;  %1598 = vmatpush.msra.mxu1 %v3006_v44 }
 0x5fc   :  { %1623 = vmatpush.msra.mxu2 %v3012_v21  ;;  %1645 = vmatpush.msra.mxu3 %v3018_v53 }
 0x676   :  { %v1365_v12 = vpop.f32.mrf.mxu0  ;;  %v1390_v57 = vpop.f32.mrf.mxu1 }
 0x677   :  { %v1368_v42 = vadd.f32 %v1365_v12, %v151_v10  ;;  %v1393_v58 = vadd.f32 %v1390_v57, %v224_v11 }
 0x679   :  { %v1369_v52 = vmul.f32 0.5, %v1368_v42  ;;  %v1394_v8 = vmul.f32 0.5, %v1393_v58 }
 0x67b   :  { %2410 = vtanh.f32 %v1369_v52 }
 0x67c   :  { %2412 = vtanh.f32 %v1394_v8  ;;  %v3218_v8 = vld [vmem:[#allocation5_spill] sm:$0xff] }
 0x67d   :  { %v1415_v14 = vpop.f32.mrf.mxu2  ;;  %v1437_v36 = vpop.f32.mrf.mxu3 }
 0x67e   :  { %v1418_v1 = vadd.f32 %v1415_v14, %v297_v13  ;;  %v1440_v47 = vadd.f32 %v1437_v36, %v370_v35  ;;  %v157_v13 = vadd.f32 %v2849_v22, %v3218_v8  ;;  %v3219_v35 = vld [vmem:[#allocation6_spill] sm:$0xff] }
 0x67f   :  { %v230_v14 = vadd.f32 %v2854_v24, %v3219_v35 }
 0x680   :  { %2414 = vtanh.f32 %v1418_v1  ;;  %v1441_v2 = vmul.f32 0.5, %v1440_v47 }
 0x681   :  { %v2411_v16 = vpop.eup %2410 }
 0x682   :  { %v2413_v59 = vpop.eup %2412  ;;  %v1371_v26 = vadd.f32 1.0, %v2411_v16  ;;  %2416 = vtanh.f32 %v1441_v2 }
 0x683   :  { %v1396_v48 = vadd.f32 1.0, %v2413_v59 }
 0x684   :  { %v1372_v60 = vmul.f32 0.5, %v1371_v26  ;;  %v3220_v26 = vld [vmem:[#allocation7_spill] sm:$0xff] }
 0x685   :  { %v1397_v39 = vmul.f32 0.5, %v1396_v48  ;;  %v303_v48 = vadd.f32 %v2867_v20, %v3220_v26 }
 0x686   :  { %v2415_v43 = vpop.eup %2414 }
 0x687   :  { %v1445_v30 = vmul.f32 %v1397_v39, %v1342_v41  ;;  %v1446_v3 = vmul.f32 %v2415_v43, %v1372_v60  ;;  %v3221_v60 = vld [vmem:[#allocation8_spill] sm:$0xff] }
 0x688   :  { %v2417_v31 = vpop.eup %2416  ;;  %v376_v39 = vadd.f32 %v2872_v28, %v3221_v60  ;;  %v3226_v60 = vld [vmem:[#allocation13_spill] sm:$0xff] }
 0x689   :  { %v1447_v54 = vadd.f32 %v1446_v3, %v1445_v30  ;;  %v1443_v4 = vadd.f32 1.0, %v2417_v31 }
 0x68b   :  { %2418 = vtanh.f32 %v1447_v54  ;;  %v1444_v17 = vmul.f32 0.5, %v1443_v4 }
 0x691   :  { %v2419_v6 = vpop.eup %2418 }
 0x692   :  { %v1449_v15 = vmul.f32 %v2419_v6, %v1444_v17 }
 0x694   :  { %2288 = vmatmul.msk.f32.vlgmr.msrb.gmra.mxu0 %vm399_vm1, %v1449_v15  ;;  %2289 = vmatmul.msk.f32.vlgmr.msrb.gmra.mxu1 %vm399_vm1, %v1449_v15 }
 0x695   :  { %2290 = vmatmul.msk.f32.vlgmr.msrb.gmra.mxu2 %vm399_vm1, %v1449_v15  ;;  %2291 = vmatmul.msk.f32.vlgmr.msrb.gmra.mxu3 %vm399_vm1, %v1449_v15 }
 0x696   :  { %1678 = vmatpush.msrb.mxu0 %v3000_v40  ;;  %1703 = vmatpush.msrb.mxu1 %v3006_v44 }
 0x697   :  { %1728 = vmatpush.msrb.mxu2 %v3012_v21  ;;  %1750 = vmatpush.msrb.mxu3 %v3018_v53 }
 0x711   :  { %v1470_v34 = vpop.f32.mrf.mxu0  ;;  %v1495_v29 = vpop.f32.mrf.mxu1 }
 0x712   :  { %v1473_v55 = vadd.f32 %v1470_v34, %v154_v23  ;;  %v1498_v49 = vadd.f32 %v1495_v29, %v227_v32 }
 0x714   :  { %v1474_v61 = vmul.f32 0.5, %v1473_v55  ;;  %v1499_v18 = vmul.f32 0.5, %v1498_v49 }
 0x716   :  { %2420 = vtanh.f32 %v1474_v61  ;;  %v3088_v61 = vld [vmem:[%s3184_s5] ss:$0 sm:$0xff] }
 0x717   :  { %2422 = vtanh.f32 %v1499_v18  ;;  %v3222_v18 = vld [vmem:[#allocation9_spill] sm:$0xff] }
 0x718   :  { %v1520_v27 = vpop.f32.mrf.mxu2  ;;  %v1542_v37 = vpop.f32.mrf.mxu3  ;;  %v160_v62 = vadd.f32 %v3088_v61, %v3222_v18 }
 0x719   :  { %v1523_v5 = vadd.f32 %v1520_v27, %v300_v56  ;;  %v1545_v25 = vadd.f32 %v1542_v37, %v373_v19  ;;  %v3095_v56 = vld [vmem:[%s3184_s5 + $0x1] ss:$0 sm:$0xff] }
 0x71a   :  { %v233_v19 = vadd.f32 %v3095_v56, %v3223_v50 }
 0x71b   :  { %2424 = vtanh.f32 %v1523_v5  ;;  %v1546_v45 = vmul.f32 0.5, %v1545_v25 }
 0x71c   :  { %v2421_v38 = vpop.eup %2420 }
 0x71d   :  { %v2423_v63 = vpop.eup %2422  ;;  %v1476_v46 = vadd.f32 1.0, %v2421_v38  ;;  %2426 = vtanh.f32 %v1546_v45 }
 0x71e   :  { %v1501_v41 = vadd.f32 1.0, %v2423_v63  ;;  %v3102_v63 = vld [vmem:[%s3184_s5 + $0x2] ss:$0 sm:$0xff] }
 0x71f   :  { %v1477_v0 = vmul.f32 0.5, %v1476_v46  ;;  %v3224_v46 = vld [vmem:[#allocation11_spill] sm:$0xff] }
 0x720   :  { %v1502_v51 = vmul.f32 0.5, %v1501_v41  ;;  %v306_v41 = vadd.f32 %v3102_v63, %v3224_v46  ;;  %v3231_v46 = vld [vmem:[#allocation18_spill] sm:$0xff] }
 0x721   :  { %v2425_v7 = vpop.eup %2424 }
 0x722   :  { %v1550_v9 = vmul.f32 %v1502_v51, %v1447_v54  ;;  %v1551_v10 = vmul.f32 %v2425_v7, %v1477_v0  ;;  %v3109_v0 = vld [vmem:[%s3184_s5 + $0x3] ss:$0 sm:$0xff]  ;;  %v3225_v51 = vld [vmem:[#allocation12_spill] sm:$0xff] }
 0x723   :  { %v2427_v11 = vpop.eup %2426  ;;  %v379_v7 = vadd.f32 %v3109_v0, %v3225_v51 }
 0x724   :  { %v1552_v12 = vadd.f32 %v1551_v10, %v1550_v9  ;;  %v1548_v57 = vadd.f32 1.0, %v2427_v11 }
 0x726   :  { %2428 = vtanh.f32 %v1552_v12  ;;  %v1549_v42 = vmul.f32 0.5, %v1548_v57 }
 0x72c   :  { %v2429_v58 = vpop.eup %2428 }
 0x72d   :  { %v1554_v52 = vmul.f32 %v2429_v58, %v1549_v42 }
 0x72f   :  { %2292 = vmatmul.msk.f32.vlgmr.msra.gmra.mxu0 %vm399_vm1, %v1554_v52  ;;  %2293 = vmatmul.msk.f32.vlgmr.msra.gmra.mxu1 %vm399_vm1, %v1554_v52 }
 0x730   :  { %2294 = vmatmul.msk.f32.vlgmr.msra.gmra.mxu2 %vm399_vm1, %v1554_v52  ;;  %2295 = vmatmul.msk.f32.vlgmr.msra.gmra.mxu3 %vm399_vm1, %v1554_v52 }
 0x731   :  { %1783 = vmatpush.msra.mxu0 %v3000_v40  ;;  %1808 = vmatpush.msra.mxu1 %v3006_v44 }
 0x732   :  { %1833 = vmatpush.msra.mxu2 %v3012_v21  ;;  %1855 = vmatpush.msra.mxu3 %v3018_v53 }
 0x7ac   :  { %v1575_v36 = vpop.f32.mrf.mxu0  ;;  %v1600_v1 = vpop.f32.mrf.mxu1 }
 0x7ad   :  { %v1578_v47 = vadd.f32 %v1575_v36, %v157_v13  ;;  %v1603_v2 = vadd.f32 %v1600_v1, %v230_v14 }
 0x7af   :  { %v1579_v16 = vmul.f32 0.5, %v1578_v47  ;;  %v1604_v59 = vmul.f32 0.5, %v1603_v2 }
 0x7b1   :  { %2430 = vtanh.f32 %v1579_v16 }
 0x7b2   :  { %2432 = vtanh.f32 %v1604_v59 }
 0x7b3   :  { %v1625_v43 = vpop.f32.mrf.mxu2  ;;  %v1647_v30 = vpop.f32.mrf.mxu3 }
 0x7b4   :  { %v1628_v22 = vadd.f32 %v1625_v43, %v303_v48  ;;  %v1650_v3 = vadd.f32 %v1647_v30, %v376_v39  ;;  %v163_v39 = vadd.f32 %v3088_v61, %v3226_v60  ;;  %v3227_v43 = vld [vmem:[#allocation14_spill] sm:$0xff] }
 0x7b5   :  { %v236_v30 = vadd.f32 %v3095_v56, %v3227_v43 }
 0x7b6   :  { %2434 = vtanh.f32 %v1628_v22  ;;  %v1651_v24 = vmul.f32 0.5, %v1650_v3 }
 0x7b7   :  { %v2431_v31 = vpop.eup %2430 }
 0x7b8   :  { %v2433_v54 = vpop.eup %2432  ;;  %v1581_v4 = vadd.f32 1.0, %v2431_v31  ;;  %2436 = vtanh.f32 %v1651_v24 }
 0x7b9   :  { %v1606_v17 = vadd.f32 1.0, %v2433_v54 }
 0x7ba   :  { %v1582_v6 = vmul.f32 0.5, %v1581_v4 }
 0x7bb   :  { %v1607_v15 = vmul.f32 0.5, %v1606_v17  ;;  %v3229_v17 = vld [vmem:[#allocation16_spill] sm:$0xff] }
 0x7bc   :  { %v2435_v23 = vpop.eup %2434 }
 0x7bd   :  { %v1655_v33 = vmul.f32 %v1607_v15, %v1552_v12  ;;  %v1656_v20 = vmul.f32 %v2435_v23, %v1582_v6 }
 0x7be   :  { %v2437_v32 = vpop.eup %2436 }
 0x7bf   :  { %v1657_v34 = vadd.f32 %v1656_v20, %v1655_v33  ;;  %v1653_v28 = vadd.f32 1.0, %v2437_v32 }
 0x7c1   :  { %2438 = vtanh.f32 %v1657_v34  ;;  %v1654_v29 = vmul.f32 0.5, %v1653_v28 }
 0x7c7   :  { %v2439_v55 = vpop.eup %2438 }
 0x7c8   :  { %v1659_v49 = vmul.f32 %v2439_v55, %v1654_v29 }
 0x7ca   :  { %2296 = vmatmul.msk.f32.vlgmr.msrb.gmra.mxu0 %vm399_vm1, %v1659_v49  ;;  %2297 = vmatmul.msk.f32.vlgmr.msrb.gmra.mxu1 %vm399_vm1, %v1659_v49 }
 0x7cb   :  { %2298 = vmatmul.msk.f32.vlgmr.msrb.gmra.mxu2 %vm399_vm1, %v1659_v49  ;;  %2299 = vmatmul.msk.f32.vlgmr.msrb.gmra.mxu3 %vm399_vm1, %v1659_v49 }
 0x7cc   :  { %1888 = vmatpush.msrb.mxu0 %v3000_v40  ;;  %1913 = vmatpush.msrb.mxu1 %v3006_v44 }
 0x7cd   :  { %1938 = vmatpush.msrb.mxu2 %v3012_v21  ;;  %1960 = vmatpush.msrb.mxu3 %v3018_v53 }
 0x847   :  { %v1680_v27 = vpop.f32.mrf.mxu0  ;;  %v1705_v37 = vpop.f32.mrf.mxu1 }
 0x848   :  { %v1683_v5 = vadd.f32 %v1680_v27, %v160_v62  ;;  %v1708_v25 = vadd.f32 %v1705_v37, %v233_v19 }
 0x84a   :  { %v1684_v45 = vmul.f32 0.5, %v1683_v5  ;;  %v1709_v38 = vmul.f32 0.5, %v1708_v25 }
 0x84c   :  { %2440 = vtanh.f32 %v1684_v45  ;;  %v3230_v45 = vld [vmem:[#allocation17_spill] sm:$0xff] }
 0x84d   :  { %2442 = vtanh.f32 %v1709_v38  ;;  %v166_v38 = vadd.f32 %v3088_v61, %v3230_v45 }
 0x84e   :  { %v1730_v9 = vpop.f32.mrf.mxu2  ;;  %v1752_v10 = vpop.f32.mrf.mxu3 }
 0x84f   :  { %v1733_v11 = vadd.f32 %v1730_v9, %v306_v41  ;;  %v1755_v12 = vadd.f32 %v1752_v10, %v379_v7  ;;  %v239_v41 = vadd.f32 %v3095_v56, %v3231_v46 }
 0x851   :  { %2444 = vtanh.f32 %v1733_v11  ;;  %v1756_v57 = vmul.f32 0.5, %v1755_v12 }
 0x852   :  { %v2441_v42 = vpop.eup %2440 }
 0x853   :  { %v2443_v58 = vpop.eup %2442  ;;  %v1686_v52 = vadd.f32 1.0, %v2441_v42  ;;  %2446 = vtanh.f32 %v1756_v57  ;;  %v3232_v57 = vld [vmem:[#allocation19_spill] sm:$0xff] }
 0x854   :  { %v1711_v8 = vadd.f32 1.0, %v2443_v58  ;;  %v312_v42 = vadd.f32 %v3102_v63, %v3232_v57  ;;  %v3233_v58 = vld [vmem:[#allocation20_spill] sm:$0xff]  ;;  %v2318_v57 = vld [vmem:[%s3187_s7] ss:$0 sm:$0xff] }
 0x855   :  { %v1687_v13 = vmul.f32 0.5, %v1686_v52  ;;  %v385_v52 = vadd.f32 %v3109_v0, %v3233_v58 }
 0x856   :  { %v1712_v35 = vmul.f32 0.5, %v1711_v8 }
 0x857   :  { %v2445_v14 = vpop.eup %2444 }
 0x858   :  { %v1760_v36 = vmul.f32 %v1712_v35, %v1657_v34  ;;  %v1761_v1 = vmul.f32 %v2445_v14, %v1687_v13 }
 0x859   :  { %v2447_v47 = vpop.eup %2446 }
 0x85a   :  { %v1762_v2 = vadd.f32 %v1761_v1, %v1760_v36  ;;  %v1758_v16 = vadd.f32 1.0, %v2447_v47 }
 0x85c   :  { %2448 = vtanh.f32 %v1762_v2  ;;  %v1759_v59 = vmul.f32 0.5, %v1758_v16 }
 0x862   :  { %v2449_v26 = vpop.eup %2448 }
 0x863   :  { %v1764_v48 = vmul.f32 %v2449_v26, %v1759_v59 }
 0x865   :  { %2300 = vmatmul.msk.f32.vlgmr.msra.gmra.mxu0 %vm399_vm1, %v1764_v48  ;;  %2301 = vmatmul.msk.f32.vlgmr.msra.gmra.mxu1 %vm399_vm1, %v1764_v48 }
 0x866   :  { %2302 = vmatmul.msk.f32.vlgmr.msra.gmra.mxu2 %vm399_vm1, %v1764_v48  ;;  %2303 = vmatmul.msk.f32.vlgmr.msra.gmra.mxu3 %vm399_vm1, %v1764_v48 }
 0x867   :  { %1993 = vmatpush.msra.mxu0 %v3000_v40  ;;  %2018 = vmatpush.msra.mxu1 %v3006_v44  ;;  %v3228_v40 = vld [vmem:[#allocation15_spill] sm:$0xff] }
 0x868   :  { %2043 = vmatpush.msra.mxu2 %v3012_v21  ;;  %2065 = vmatpush.msra.mxu3 %v3018_v53  ;;  %v309_v44 = vadd.f32 %v3102_v63, %v3228_v40  ;;  %v382_v21 = vadd.f32 %v3109_v0, %v3229_v17 }
 0x8e2   :  { %v1785_v22 = vpop.f32.mrf.mxu0  ;;  %v1810_v3 = vpop.f32.mrf.mxu1 }
 0x8e3   :  { %v1788_v24 = vadd.f32 %v1785_v22, %v163_v39  ;;  %v1813_v31 = vadd.f32 %v1810_v3, %v236_v30 }
 0x8e5   :  { %v1789_v54 = vmul.f32 0.5, %v1788_v24  ;;  %v1814_v4 = vmul.f32 0.5, %v1813_v31 }
 0x8e7   :  { %2450 = vtanh.f32 %v1789_v54  ;;  %v2081_v54 = vld [vmem:[%s3188_s6] sm:$0xff] }
 0x8e8   :  { %2452 = vtanh.f32 %v1814_v4  ;;  %v3234_v4 = vld [vmem:[#allocation21_spill] sm:$0xff] }
 0x8e9   :  { %v1835_v53 = vpop.f32.mrf.mxu2  ;;  %v1857_v6 = vpop.f32.mrf.mxu3  ;;  %v169_v40 = vadd.f32 %v3088_v61, %v3234_v4  ;;  %v3236_v61 = vld [vmem:[#allocation23_spill] sm:$0xff] }
 0x8ea   :  { %v1838_v15 = vadd.f32 %v1835_v53, %v309_v44  ;;  %v1860_v23 = vadd.f32 %v1857_v6, %v382_v21  ;;  %v3235_v44 = vld [vmem:[#allocation22_spill] sm:$0xff]  ;;  %v2113_v6 = vld [vmem:[%s3189_s8 + $0x18] sm:$0xff] }
 0x8eb   :  { %v242_v17 = vadd.f32 %v3095_v56, %v3235_v44  ;;  %v315_v56 = vadd.f32 %v3102_v63, %v3236_v61 }
 0x8ec   :  { %2454 = vtanh.f32 %v1838_v15  ;;  %v1861_v33 = vmul.f32 0.5, %v1860_v23  ;;  %v2112_v15 = vld [vmem:[%s3189_s8 + $0x10] sm:$0xff] }
 0x8ed   :  { %v2451_v20 = vpop.eup %2450 }
 0x8ee   :  { %v2453_v32 = vpop.eup %2452  ;;  %v1791_v34 = vadd.f32 1.0, %v2451_v20  ;;  %2456 = vtanh.f32 %v1861_v33 }
 0x8ef   :  { %v1816_v28 = vadd.f32 1.0, %v2453_v32 }
 0x8f0   :  { %v1792_v29 = vmul.f32 0.5, %v1791_v34  ;;  %v3237_v34 = vld [vmem:[#allocation24_spill] sm:$0xff] }
 0x8f1   :  { %v1817_v55 = vmul.f32 0.5, %v1816_v28  ;;  %v388_v28 = vadd.f32 %v3109_v0, %v3237_v34 }
 0x8f2   :  { %v2455_v49 = vpop.eup %2454 }
 0x8f3   :  { %v1865_v18 = vmul.f32 %v1817_v55, %v1762_v2  ;;  %v1866_v62 = vmul.f32 %v2455_v49, %v1792_v29 }
 0x8f4   :  { %v2457_v50 = vpop.eup %2456 }
 0x8f5   :  { %v1867_v19 = vadd.f32 %v1866_v62, %v1865_v18  ;;  %v1863_v27 = vadd.f32 1.0, %v2457_v50 }
 0x8f7   :  { %2458 = vtanh.f32 %v1867_v19  ;;  %v1864_v37 = vmul.f32 0.5, %v1863_v27 }
 0x8fd   :  { %v2459_v5 = vpop.eup %2458 }
 0x8fe   :  { %v1869_v25 = vmul.f32 %v2459_v5, %v1864_v37 }
 0x900   :  { %2304 = vmatmul.msk.f32.vlgmr.msrb.gmra.mxu0 %vm399_vm1, %v1869_v25  ;;  %2305 = vmatmul.msk.f32.vlgmr.msrb.gmra.mxu1 %vm399_vm1, %v1869_v25 }
 0x901   :  { %2306 = vmatmul.msk.f32.vlgmr.msrb.gmra.mxu2 %vm399_vm1, %v1869_v25  ;;  %2307 = vmatmul.msk.f32.vlgmr.msrb.gmra.mxu3 %vm399_vm1, %v1869_v25 }
 0x902   :  { %2104 = vmatpush.msrb.mxu0 %v2081_v54  ;;  %2134 = vmatpush.msrb.mxu1 %v2113_v6 }
 0x904   :  { %2135 = vmatpush.msrb.mxu1 %v2112_v15 }
 0x97d   :  { %v1890_v51 = vpop.f32.mrf.mxu0  ;;  %v1915_v7 = vpop.f32.mrf.mxu1 }
 0x97e   :  { %v1893_v9 = vadd.f32 %v1890_v51, %v166_v38  ;;  %v1918_v10 = vadd.f32 %v1915_v7, %v239_v41 }
 0x980   :  { %v1894_v11 = vmul.f32 0.5, %v1893_v9  ;;  %v1919_v12 = vmul.f32 0.5, %v1918_v10 }
 0x982   :  { %2460 = vtanh.f32 %v1894_v11  ;;  %v2111_v11 = vld [vmem:[%s3189_s8 + $0x8] sm:$0xff] }
 0x983   :  { %2462 = vtanh.f32 %v1919_v12  ;;  %2136 = vmatpush.msrb.mxu1 %v2111_v11  ;;  %v2110_v12 = vld [vmem:[%s3189_s8] sm:$0xff] }
 0x984   :  { %v1940_v8 = vpop.f32.mrf.mxu2  ;;  %v1962_v13 = vpop.f32.mrf.mxu3 }
 0x985   :  { %v1943_v35 = vadd.f32 %v1940_v8, %v312_v42  ;;  %v1965_v14 = vadd.f32 %v1962_v13, %v385_v52  ;;  %2137 = vmatpush.msrb.mxu1 %v2110_v12  ;;  %v2319_v8 = vld [vmem:[%s3190_s9] ss:$0 sm:$0xff] }
 0x987   :  { %2464 = vtanh.f32 %v1943_v35  ;;  %v1966_v36 = vmul.f32 0.5, %v1965_v14 }
 0x988   :  { %v2461_v1 = vpop.eup %2460 }
 0x989   :  { %v2463_v47 = vpop.eup %2462  ;;  %v1896_v2 = vadd.f32 1.0, %v2461_v1  ;;  %2466 = vtanh.f32 %v1966_v36 }
 0x98a   :  { %v1921_v16 = vadd.f32 1.0, %v2463_v47 }
 0x98b   :  { %v1897_v59 = vmul.f32 0.5, %v1896_v2 }
 0x98c   :  { %v1922_v26 = vmul.f32 0.5, %v1921_v16 }
 0x98d   :  { %v2465_v48 = vpop.eup %2464 }
 0x98e   :  { %v1970_v60 = vmul.f32 %v1922_v26, %v1867_v19  ;;  %v1971_v39 = vmul.f32 %v2465_v48, %v1897_v59 }
 0x98f   :  { %v2467_v43 = vpop.eup %2466 }
 0x990   :  { %v1972_v30 = vadd.f32 %v1971_v39, %v1970_v60  ;;  %v1968_v22 = vadd.f32 1.0, %v2467_v43 }
 0x992   :  { %2468 = vtanh.f32 %v1972_v30  ;;  %v1969_v3 = vmul.f32 0.5, %v1968_v22 }
 0x998   :  { %v2469_v24 = vpop.eup %2468 }
 0x999   :  { %v1974_v31 = vmul.f32 %v2469_v24, %v1969_v3 }
 0x99b   :  { %2308 = vmatmul.msk.f32.vlgmr.msra.gmra.mxu0 %vm399_vm1, %v1974_v31  ;;  %2309 = vmatmul.msk.f32.vlgmr.msra.gmra.mxu1 %vm399_vm1, %v1974_v31 }
 0x99c   :  { %2310 = vmatmul.msk.f32.vlgmr.msra.gmra.mxu2 %vm399_vm1, %v1974_v31  ;;  %2311 = vmatmul.msk.f32.vlgmr.msra.gmra.mxu3 %vm399_vm1, %v1974_v31 }
 0xa18   :  { %v1995_v21 = vpop.f32.mrf.mxu0  ;;  %v2020_v53 = vpop.f32.mrf.mxu1 }
 0xa19   :  { %v1998_v23 = vadd.f32 %v1995_v21, %v169_v40  ;;  %v2023_v33 = vadd.f32 %v2020_v53, %v242_v17 }
 0xa1b   :  { %v1999_v20 = vmul.f32 0.5, %v1998_v23  ;;  %v2024_v32 = vmul.f32 0.5, %v2023_v33 }
 0xa1d   :  { %2470 = vtanh.f32 %v1999_v20 }
 0xa1e   :  { %2472 = vtanh.f32 %v2024_v32 }
 0xa1f   :  { %v2045_v29 = vpop.f32.mrf.mxu2  ;;  %v2067_v55 = vpop.f32.mrf.mxu3 }
 0xa20   :  { %v2048_v49 = vadd.f32 %v2045_v29, %v315_v56  ;;  %v2070_v18 = vadd.f32 %v2067_v55, %v388_v28 }
 0xa22   :  { %2474 = vtanh.f32 %v2048_v49  ;;  %v2071_v62 = vmul.f32 0.5, %v2070_v18 }
 0xa23   :  { %v2471_v50 = vpop.eup %2470 }
 0xa24   :  { %v2473_v19 = vpop.eup %2472  ;;  %v2001_v27 = vadd.f32 1.0, %v2471_v50  ;;  %2476 = vtanh.f32 %v2071_v62 }
 0xa25   :  { %v2026_v37 = vadd.f32 1.0, %v2473_v19 }
 0xa26   :  { %v2002_v5 = vmul.f32 0.5, %v2001_v27 }
 0xa27   :  { %v2027_v25 = vmul.f32 0.5, %v2026_v37 }
 0xa28   :  { %v2475_v45 = vpop.eup %2474 }
 0xa29   :  { %v2075_v38 = vmul.f32 %v2027_v25, %v1972_v30  ;;  %v2076_v63 = vmul.f32 %v2475_v45, %v2002_v5 }
 0xa2a   :  { %v2477_v46 = vpop.eup %2476 }
 0xa2b   :  { %v2077_v41 = vadd.f32 %v2076_v63, %v2075_v38  ;;  %v2073_v0 = vadd.f32 1.0, %v2477_v46 }
 0xa2d   :  { %2478 = vtanh.f32 %v2077_v41  ;;  %v2074_v51 = vmul.f32 0.5, %v2073_v0 }
 0xa33   :  { %v2479_v7 = vpop.eup %2478 }
 0xa34   :  { %v2079_v9 = vmul.f32 %v2479_v7, %v2074_v51 }
 0xa36   :  { %v2080_v10 = vmax.f32 %v2079_v9, 0.0 }
 0xa38   :  { %2312 = vmatmul.msk.f32.vlgmr.msrb.gmra.mxu0 %vm399_vm1, %v2080_v10 }
 0xab5   :  { %v2106_v42 = vpop.f32.mrf.mxu0 }
 0xab6   :  { %v2107_v58 = vadd.f32 %v2318_v57, %v2106_v42 }
 0xab8   :  { %v2109_v52 = vmax.f32 %v2107_v58, 0.0 }
 0xaba   :  { %2313 = vmatmul.msk.f32.vlgmr.msrb.gmra.mxu1 %vm2118_vm2, %v2109_v52 }
 0xb37   :  { %v2139_v13 = vpop.f32.mrf.mxu1 }
 0xb38   :  { %v2140_v35 = vadd.f32 %v2319_v8, %v2139_v13 }
 0xb3a   :  { %v2143_v14 = vsel %vm2142_vm3, %v2140_v35, -inf }
 0xb3b   :  { %2144 = vmax.xlane.f32.xlu0 %v2143_v14 }
 0xbae   :  { %v2145_v36 = vpop.xlane.xlu0 %2144 }
 0xbaf   :  { %v2146_v1 = vsub.f32 %v2140_v35, %v2145_v36 }
 0xbb1   :  { %v2147_v47 = vmul.f32 1.442695, %v2146_v1 }
 0xbb3   :  { %2480 = vpow2.f32 %v2147_v47 }
 0xbb9   :  { %v2481_v2 = vpop.eup %2480 }
 0xbba   :  { %v2149_v16 = vsel %vm2142_vm3, %v2481_v2, 0.0 }
 0xbbb   :  { %2150 = vadd.xlane.f32.xlu0 %v2149_v16 }
 0xc2e   :  { %v2151_v59 = vpop.xlane.xlu0 %2150 }
 0xc2f   :  { %2482 = vrcp.f32 %v2151_v59  ;;  %v2163_v39 = vand.u32 2147483648, %v2151_v59  ;;  %v2161_v30 = vand.u32 2147483647, %v2151_v59  ;;  %vm2157_vm5 = vweird.f32 %v2151_v59 }
 0xc31   :  { %v2164_v3 = vor.u32 1.1754944e-38, %v2163_v39  ;;  %vm2162_vm7 = vcmp.eq.f32.partialorder %v2161_v30, 8.507059e+37 }
 0xc35   :  { %v2483_v26 = vpop.eup %2482 }
 0xc36   :  { %v2153_v48 = vmul.f32 %v2483_v26, %v2151_v59  ;;  %vm2158_vm4 = vweird.f32 %v2483_v26 }
 0xc37   :  { %vm2159_vm6 = vmor %vm2157_vm5, %vm2158_vm4 }
 0xc38   :  { %v2154_v60 = vsub.f32 1.0, %v2153_v48 }
 0xc3a   :  { %v2155_v43 = vmul.f32 %v2483_v26, %v2154_v60 }
 0xc3c   :  { %v2156_v22 = vadd.f32 %v2483_v26, %v2155_v43 }
 0xc3e   :  { %v2160_v24 = vsel %vm2159_vm6, %v2483_v26, %v2156_v22 }
 0xc3f   :  { %v2165_v31 = vsel %vm2162_vm7, %v2164_v3, %v2160_v24 }
 0xc40   :  { %v2166_v54 = vmul.f32 %v2481_v2, %v2165_v31 }
 0xc42   :  { %2167 = vst.msk [vmem:[%s3191_s10] sm:$0xff] %vm2142_vm3, %v2166_v54 }

</bundles_post_ra>
